<compile_context>
chip_gen: v7x
topology: tpu7x:2x2x1
jax: 0.10.0
libtpu: 0.0.40
codegen_flags: <defaults>
</compile_context>

<pallas_src>
import functools
import math

import numpy as np
import jax
import jax.numpy as jnp
from jax import lax
from jax.experimental import pallas as pl
from jax.experimental.pallas import tpu as pltpu


# ----------------------------------------------------------------------------------
# Config:  LFQ(codebook_size=16, Cvae=4, v_patch_nums=(4, 8, 16), quant_resi=0.5,
#              share_quant_resi=4, num_latent_tokens=256, beta=0.25, scale=1, ...)
# ----------------------------------------------------------------------------------
CVAE = 4
CODEBOOK_SIZE = 2 ** CVAE
V_PATCH_NUMS = (4, 8, 16)
NUM_LATENT_TOKENS = 256          # sqrt == 16 == H == W == last patch num
QUANT_RESI = 0.5
SHARE_QUANT_RESI = 4
BETA = 0.25
ENTROPY_WEIGHT = 0.1
SAMPLE_MIN_W = 1.0
BATCH_MAX_W = 1.0
SCALE = 1.0
USING_ZNORM = False
B_BLK = 2                        # images per 128-lane block (2 * 16 * 4 == 128)


# ----------------------------------------------------------------------------------
# Exact interpolation matrices (match torch F.interpolate semantics)
# ----------------------------------------------------------------------------------
def area_resize_matrix(n_in: int, n_out: int) -> np.ndarray:
    """Reproduces F.interpolate(mode='area') (adaptive average pooling)."""
    M = np.zeros((n_out, n_in), dtype=np.float64)
    for i in range(n_out):
        start = (i * n_in) // n_out
        end = -((-(i + 1) * n_in) // n_out)     # ceil
        M[i, start:end] = 1.0 / (end - start)
    return M.astype(np.float32)


def bicubic_resize_matrix(n_in: int, n_out: int, a: float = -0.75) -> np.ndarray:
    """Reproduces torch F.interpolate(mode='bicubic', align_corners=False)."""
    def w_inner(t):      # |x| <= 1
        return ((a + 2.0) * t - (a + 3.0)) * t * t + 1.0

    def w_outer(t):      # 1 < |x| < 2
        return (((t - 5.0) * t + 8.0) * t - 4.0) * a

    M = np.zeros((n_out, n_in), dtype=np.float64)
    scale = n_in / n_out
    for i in range(n_out):
        src = (i + 0.5) * scale - 0.5
        x0 = int(np.floor(src))
        t = src - x0
        ws = (w_outer(t + 1.0), w_inner(t), w_inner(1.0 - t), w_outer(2.0 - t))
        for k, wv in enumerate(ws):
            j = min(max(x0 - 1 + k, 0), n_in - 1)   # border clamp (like torch)
            M[i, j] += wv
    return M.astype(np.float32)


def _phi_index(si: int, SN: int, K: int) -> int:
    ticks = (np.linspace(1 / 3 / K, 1 - 1 / 3 / K, K) if K == 4
             else np.linspace(1 / 2 / K, 1 - 1 / 2 / K, K))
    return int(np.argmin(np.abs(ticks - (si / (SN - 1)))))


def lane_resize_matrix(M: np.ndarray, B: int, C: int) -> np.ndarray:
    """(B*n_in*C, B*n_out*C) block matrix applying M along the W axis of the
    lane-packed (b, w, c) minor dimension (right-multiplication)."""
    return np.kron(np.eye(B, dtype=np.float32),
                   np.kron(M.T, np.eye(C, dtype=np.float32))).astype(np.float32)


@functools.lru_cache(maxsize=None)
def _static_consts(H, W, C, b_blk, v_patch_nums):
    """Weight-independent numpy constants for one 2-image (128-lane) block."""
    pns = v_patch_nums[:-1]
    assert len(pns) == 2 and all(pn <= 8 for pn in pns)
    apack = np.zeros((16, H), np.float32)            # rows 0:pn0 = A_down0, rows 8:8+pn1 = A_down1
    rd, u, ru = [], [], []
    for i, pn in enumerate(pns):
        A = area_resize_matrix(H, pn)                # (pn, H)   left matmul (H axis)
        U = bicubic_resize_matrix(pn, H)             # (H, pn)   left matmul (H axis)
        apack[8 * i: 8 * i + pn, :] = A
        rd.append(lane_resize_matrix(A, b_blk, C))   # (B*W*C, B*pn*C)  right matmul (W axis)
        u.append(U)
        ru.append(lane_resize_matrix(U, b_blk, C))   # (B*pn*C, B*W*C)  right matmul (W axis)
    bigpat = np.stack([np.kron(np.eye(b_blk, dtype=np.float32),
                               np.eye(W, k=1 - dx, dtype=np.float32))
                       for dx in range(3)])          # (3, B*W, B*W) conv dx patterns
    return dict(apack=apack, rd=tuple(rd), u=tuple(u), ru=tuple(ru), bigpat=bigpat)


def _phi_device_consts(phi_w, phi_b, st, b_blk, W, C, SN):
    """Phi-dependent kernel constants, built on-device under jit (weights are traced).

    Per scale / conv row dy: a (B*W*C, B*W*C) lane matrix implements the dx + channel mixing
    of the zero-padded 3x3 conv; resi_ratio and the (1-resi_ratio)*I of Phi are folded in,
    the 3 dy matrices are concatenated along N, and for the downsampled scales the bicubic
    up lane matrix is folded in from the left (RU @ RM) so the kernel does one matmul."""
    r = abs(QUANT_RESI)
    Lb = b_blk * W * C
    eye_l = np.eye(Lb, dtype=np.float32)
    rm_blocks, bias_rows = [], []
    for si in range(SN):
        k = _phi_index(si, SN, SHARE_QUANT_RESI)
        wk = phi_w[k].astype(jnp.float32)                        # (3, 3, C_in, C_out) HWIO
        dys = []
        for dy in range(3):
            m = None
            for dx in range(3):
                term = jnp.kron(st["bigpat"][dx], wk[dy, dx])    # (Lb, Lb)
                m = term if m is None else m + term
            m = r * m
            if dy == 1:                                          # identity row shift
                m = m + (1.0 - r) * eye_l
            dys.append(m)
        rm_cat = jnp.concatenate(dys, axis=1)                    # (Lb, 3*Lb)
        if si < SN - 1:
            rm_cat = jnp.dot(st["ru"][si], rm_cat)               # fold bicubic W-upsample
        rm_blocks.append(rm_cat)
        bias_rows.append(jnp.tile(phi_b[k].astype(jnp.float32), b_blk * W) * r)
    rm_pack = jnp.concatenate(rm_blocks, axis=0).astype(jnp.bfloat16)   # (32+64+128, 3*Lb)
    bias = jnp.stack(bias_rows, axis=0)                                  # (SN, Lb) f32
    return rm_pack, bias


# ----------------------------------------------------------------------------------
# Fused LFQ forward kernel (one grid step == one 2-image, 128-lane block)
# ----------------------------------------------------------------------------------
def _lfq_fused_kernel(f_ref, apack_ref, rd4_ref, rd8_ref, u4_ref, u8_ref,
                      rm_ref, bias_ref, fhat_ref, part_ref, *,
                      scaler, n_chan, pns, b_blk):
    eps = 1e-8
    f = f_ref[...]                                    # (H, 128) f32, lanes = (b, w, c)
    H, L = f.shape
    row = lax.broadcasted_iota(jnp.int32, (H, L), 0)
    lane = lax.broadcasted_iota(jnp.int32, (1, L), 1)

    r0 = b_blk * pns[0] * n_chan                      # row extents of the packed RM blocks
    r1 = b_blk * pns[1] * n_chan
    rm_offs = (0, r0, r0 + r1)

    f_rest = f
    f_hat = jnp.zeros_like(f)
    prow_list = []

    n_scales = len(scaler)
    for si in range(n_scales):
        cv = scaler[si]
        z = f_rest                                    # residual BEFORE this scale's update

        # ---- analytical entropy statistics on the full-res residual ----
        p = jax.nn.sigmoid((-4.0 * cv) * z)
        ps_sum = jnp.sum(-(p * jnp.log(p + eps) + (1.0 - p) * jnp.log(1.0 - p + eps)))
        # per-channel sums of p: lane roll-fold (XLU) -> every lane holds its channel total
        q = p
        shift = n_chan
        while shift < L:
            q = q + pltpu.roll(q, shift=shift, axis=1)
            shift *= 2
        q_row = jnp.where(lane < n_chan, jnp.sum(q, axis=0, keepdims=True), 0.0)

        # ---- area down (f32: exact quantization sign) -> sign quantize ->
        #      fused (bicubic up o Phi lane-mix) as one bf16 MXU matmul ----
        if si < n_scales - 1:
            pn = pns[si]
            a = apack_ref[8 * si: 8 * si + pn, :]                      # (pn, H) f32
            rd = rd4_ref[...] if si == 0 else rd8_ref[...]             # (L, B*pn*C) f32
            u = u4_ref[...] if si == 0 else u8_ref[...]                # (H, pn) bf16
            t = jnp.dot(a, z, preferred_element_type=jnp.float32)      # H-axis area
            t = jnp.dot(t, rd, preferred_element_type=jnp.float32)     # W-axis area
            d = jnp.where(t > 0.0, cv, -cv).astype(jnp.bfloat16)       # LFQ (exact in bf16)
            rm = rm_ref[rm_offs[si]: rm_offs[si + 1], :]               # (B*pn*C, 3L) bf16
            pre = jnp.dot(d, rm, preferred_element_type=jnp.float32)   # W-up + dx/chan mix
            full = jnp.dot(u, pre.astype(jnp.bfloat16),
                           preferred_element_type=jnp.float32)         # H-axis bicubic up
        else:
            hq = jnp.where(z > 0.0, cv, -cv).astype(jnp.bfloat16)
            rm = rm_ref[rm_offs[si]:, :]                               # (L, 3L) bf16
            full = jnp.dot(hq, rm, preferred_element_type=jnp.float32)

        # ---- dy(row) part of the 3x3 conv: sublane rolls + boundary masks.
        #      (1-resi_ratio)*I, resi_ratio and bias*resi_ratio are already folded in. ----
        c0 = full[:, 0:L]
        c1 = full[:, L:2 * L]
        c2 = full[:, 2 * L:3 * L]
        up = jnp.where(row == 0, 0.0, pltpu.roll(c0, shift=1, axis=0))
        dn = jnp.where(row == H - 1, 0.0, pltpu.roll(c2, shift=H - 1, axis=0))
        h_phi = up + c1 + dn + bias_ref[si:si + 1, :]

        # ---- residual / accumulator update + per-scale MSE partial ----
        f_hat = f_hat + h_phi
        f_rest = z - h_phi
        diff = f_hat - f
        mse_sum = jnp.sum(diff * diff)

        # per-scale partial row: lanes 0..C-1 = channel p-sums, lane C = sum((f_hat-f)^2),
        # lane C+1 = sum of per-sample binary entropies (block-local, combined in wrapper)
        prow_list.append(q_row
                         + jnp.where(lane == n_chan, mse_sum, 0.0)
                         + jnp.where(lane == n_chan + 1, ps_sum, 0.0))

    fhat_ref[...] = f_hat
    part_ref[...] = jnp.concatenate(prow_list, axis=0)


# ----------------------------------------------------------------------------------
# LFQ forward (multi-scale residual lookup-free quantization)
# ----------------------------------------------------------------------------------
@jax.jit
def _lfq_forward_jit(f_BChw, phi_w, phi_b):
    f_BChw = f_BChw.astype(jnp.float32)
    B, C, H, W = f_BChw.shape
    SN = len(V_PATCH_NUMS)
    assert SN == 3 and V_PATCH_NUMS[-1] == H == W and C == CVAE
    assert B % B_BLK == 0 and B_BLK * W * C == 128, "lane-dense layout needs 2*W*C == 128"
    n_blk = B // B_BLK
    Lb = B_BLK * W * C
    L = B * W * C

    scaler = tuple(float(SCALE ** s) for s in range(SN))
    if USING_ZNORM:
        scaler = tuple(s / math.sqrt(C) for s in scaler)

    st = _static_consts(H, W, C, B_BLK, V_PATCH_NUMS)
    rm_pack, bias = _phi_device_consts(phi_w, phi_b, st, B_BLK, W, C, SN)

    apack = jnp.asarray(st["apack"])
    rd4 = jnp.asarray(st["rd"][0])
    rd8 = jnp.asarray(st["rd"][1])
    u4 = jnp.asarray(st["u"][0], dtype=jnp.bfloat16)
    u8 = jnp.asarray(st["u"][1], dtype=jnp.bfloat16)

    # lane-dense view: rows = H, lanes = (b, w, c); 128-lane blocks = batch pairs
    f_l = jnp.transpose(f_BChw, (2, 0, 3, 1)).reshape(H, L)

    kern = functools.partial(_lfq_fused_kernel, scaler=scaler, n_chan=C,
                             pns=tuple(V_PATCH_NUMS[:-1]), b_blk=B_BLK)

    def full_spec(a):
        return pl.BlockSpec(a.shape, lambda i: (0, 0))

    in_specs = [
        pl.BlockSpec((H, Lb), lambda i: (0, i)),
        full_spec(apack), full_spec(rd4), full_spec(rd8),
        full_spec(u4), full_spec(u8), full_spec(rm_pack), full_spec(bias),
    ]
    out_specs = (pl.BlockSpec((H, Lb), lambda i: (0, i)),
                 pl.BlockSpec((SN, Lb), lambda i: (0, i)))
    out_shape = (jax.ShapeDtypeStruct((H, L), jnp.float32),
                 jax.ShapeDtypeStruct((SN, n_blk * Lb), jnp.float32))

    # cost hint (per 128-lane block): matmuls + elementwise; constants + per-block I/O
    pn0, pn1 = V_PATCH_NUMS[0], V_PATCH_NUMS[1]
    k0, k1 = B_BLK * pn0 * C, B_BLK * pn1 * C
    mm = 2 * (pn0 * H * Lb + pn0 * Lb * k0 + pn0 * k0 * 3 * Lb + H * pn0 * 3 * Lb
              + pn1 * H * Lb + pn1 * Lb * k1 + pn1 * k1 * 3 * Lb + H * pn1 * 3 * Lb
              + H * Lb * 3 * Lb)
    vec = 48 * H * Lb * SN
    const_bytes = sum(int(np.prod(a.shape)) * a.dtype.itemsize
                      for a in (apack, rd4, rd8, u4, u8, rm_pack, bias))
    cost = pl.CostEstimate(flops=int(n_blk * (mm + vec)),
                           transcendentals=int(n_blk * 3 * H * Lb * SN),
                           bytes_accessed=int(const_bytes
                                              + 4 * (2 * H * L + SN * n_blk * Lb)))

    f_hat_l, parts = pl.pallas_call(
        kern,
        grid=(n_blk,),
        in_specs=in_specs,
        out_specs=out_specs,
        out_shape=out_shape,
        compiler_params=pltpu.CompilerParams(
            dimension_semantics=("parallel",),
            vmem_limit_bytes=16 * 1024 * 1024),
        cost_estimate=cost,
    )(f_l, apack, rd4, rd8, u4, u8, rm_pack, bias)

    # ---- combine block-local partial sums into the three scalar losses (fused under jit) ----
    eps = 1e-8
    inv_bhw = 1.0 / (B * H * W)
    psum = parts.reshape(SN, n_blk, Lb).sum(axis=1)                  # (SN, 128)
    q = psum[:, :C] * inv_bhw                                        # codebook avg prob per dim
    mse = psum[:, C] * (inv_bhw / C)                                 # per-scale MSE mean
    ps = psum[:, C + 1] * inv_bhw                                    # per-sample entropy mean
    cb = -jnp.sum(q * jnp.log(q + eps) + (1.0 - q) * jnp.log(1.0 - q + eps), axis=-1)
    mean_vq = jnp.mean(mse)
    mean_commit = BETA * jnp.mean(mse)
    mean_ent = jnp.mean(ENTROPY_WEIGHT * (SAMPLE_MIN_W * ps - BATCH_MAX_W * cb))

    # straight-through `(f_hat.data - f_no_grad) + f` is forward-identical to f_hat
    f_hat = jnp.transpose(f_hat_l.reshape(H, B, W, C), (1, 3, 0, 2))     # -> NCHW
    return f_hat, mean_vq, mean_commit, mean_ent


def lfq_forward(f_BChw, phi_w, phi_b):
    """f_BChw: (B, C, H, W); phi_w: (K, 3, 3, C, C) HWIO; phi_b: (K, C).
    Returns (f_hat, usages, mean_vq_loss, mean_commit_loss, mean_entropy_loss)."""
    f_hat, vq, commit, ent = _lfq_forward_jit(f_BChw, phi_w, phi_b)
    usages = None            # ret_usages=False path of the reference forward
    return f_hat, usages, vq, commit, ent


# ----------------------------------------------------------------------------------
if __name__ == "__main__":
    assert 2 ** CVAE == CODEBOOK_SIZE

    key = jax.random.PRNGKey(0)
    k_in, k_w, k_b = jax.random.split(key, 3)

    # B=4 -> two 128-lane batch-pair blocks: exercises the "parallel" batch grid
    B, C, H, W = 4, CVAE, 16, 16
    f = jax.random.normal(k_in, (B, C, H, W), jnp.float32)

    # Phi parameters: SHARE_QUANT_RESI independent Conv2d(C, C, 3, padding=1) modules,
    # deterministic uniform init (same shapes as nn.Conv2d weight/bias, HWIO layout).
    fan_in = C * 9
    bound = 1.0 / math.sqrt(fan_in)
    phi_w = jax.random.uniform(k_w, (SHARE_QUANT_RESI, 3, 3, C, C), jnp.float32,
                               -bound, bound)
    phi_b = jax.random.uniform(k_b, (SHARE_QUANT_RESI, C), jnp.float32, -bound, bound)

    f_hat, usages, vq_loss, commit_loss, entropy_loss_v = lfq_forward(f, phi_w, phi_b)
    jax.block_until_ready((f_hat, vq_loss, commit_loss, entropy_loss_v))

    assert f_hat.shape == (B, C, H, W)
    assert usages is None
    assert all(bool(jnp.isfinite(v)) for v in (vq_loss, commit_loss, entropy_loss_v))
    assert bool(jnp.all(jnp.isfinite(f_hat)))
    print("KERNEL_OK")
</pallas_src>

<mosaic_0001>
module attributes {stable_mosaic.version = 11 : i64} {
  func.func @_lfq_fused_kernel(%arg0: i32, %arg1: memref<16x128xf32, #tpu.memory_space<vmem>>, %arg2: memref<16x16xf32, #tpu.memory_space<vmem>>, %arg3: memref<128x32xf32, #tpu.memory_space<vmem>>, %arg4: memref<128x64xf32, #tpu.memory_space<vmem>>, %arg5: memref<16x4xbf16, #tpu.memory_space<vmem>>, %arg6: memref<16x8xbf16, #tpu.memory_space<vmem>>, %arg7: memref<224x384xbf16, #tpu.memory_space<vmem>>, %arg8: memref<3x128xf32, #tpu.memory_space<vmem>>, %arg9: memref<16x128xf32, #tpu.memory_space<vmem>>, %arg10: memref<3x128xf32, #tpu.memory_space<vmem>>) attributes {dimension_semantics = [#tpu.dimension_semantics<parallel>], iteration_bounds = array<i64: 2>, scalar_prefetch = 0 : i64, scratch_operands = 0 : i64, tpu.core_type = #tpu.core_type<tc>, window_params = [{transform_indices = @transform_0, window_bounds = array<i64: 16, 128>}, {pipeline_mode = #tpu.pipeline_mode<synchronous>, transform_indices = @transform_1, window_bounds = array<i64: 16, 16>}, {pipeline_mode = #tpu.pipeline_mode<synchronous>, transform_indices = @transform_2, window_bounds = array<i64: 128, 32>}, {pipeline_mode = #tpu.pipeline_mode<synchronous>, transform_indices = @transform_3, window_bounds = array<i64: 128, 64>}, {pipeline_mode = #tpu.pipeline_mode<synchronous>, transform_indices = @transform_4, window_bounds = array<i64: 16, 4>}, {pipeline_mode = #tpu.pipeline_mode<synchronous>, transform_indices = @transform_5, window_bounds = array<i64: 16, 8>}, {pipeline_mode = #tpu.pipeline_mode<synchronous>, transform_indices = @transform_6, window_bounds = array<i64: 224, 384>}, {pipeline_mode = #tpu.pipeline_mode<synchronous>, transform_indices = @transform_7, window_bounds = array<i64: 3, 128>}, {transform_indices = @transform_8, window_bounds = array<i64: 16, 128>}, {transform_indices = @transform_9, window_bounds = array<i64: 3, 128>}]} {
    %c0 = arith.constant 0 : index
    %c0_0 = arith.constant 0 : index
    %0 = vector.load %arg1[%c0, %c0_0] : memref<16x128xf32, #tpu.memory_space<vmem>>, vector<16x128xf32>
    %1 = tpu.iota {dimensions = array<i32: 0>} : vector<16x128xi32>
    %2 = tpu.iota {dimensions = array<i32: 1>} : vector<1x128xi32>
    %cst = arith.constant 0.000000e+00 : f32
    %3 = vector.broadcast %cst : f32 to vector<16x128xf32>
    %cst_1 = arith.constant -4.000000e+00 : f32
    %4 = vector.broadcast %cst_1 : f32 to vector<16x128xf32>
    %5 = arith.mulf %4, %0 : vector<16x128xf32>
    %6 = arith.negf %5 : vector<16x128xf32>
    %7 = math.exp %6 : vector<16x128xf32>
    %cst_2 = arith.constant 1.000000e+00 : f32
    %8 = vector.broadcast %cst_2 : f32 to vector<16x128xf32>
    %9 = arith.addf %8, %7 : vector<16x128xf32>
    %10 = arith.divf %8, %9 : vector<16x128xf32>
    %cst_3 = arith.constant 9.99999993E-9 : f32
    %11 = vector.broadcast %cst_3 : f32 to vector<16x128xf32>
    %12 = arith.addf %10, %11 : vector<16x128xf32>
    %13 = math.log %12 : vector<16x128xf32>
    %14 = arith.mulf %10, %13 : vector<16x128xf32>
    %cst_4 = arith.constant 1.000000e+00 : f32
    %15 = vector.broadcast %cst_4 : f32 to vector<16x128xf32>
    %16 = arith.subf %15, %10 : vector<16x128xf32>
    %cst_5 = arith.constant 1.000000e+00 : f32
    %17 = vector.broadcast %cst_5 : f32 to vector<16x128xf32>
    %18 = arith.subf %17, %10 : vector<16x128xf32>
    %cst_6 = arith.constant 9.99999993E-9 : f32
    %19 = vector.broadcast %cst_6 : f32 to vector<16x128xf32>
    %20 = arith.addf %18, %19 : vector<16x128xf32>
    %21 = math.log %20 : vector<16x128xf32>
    %22 = arith.mulf %16, %21 : vector<16x128xf32>
    %23 = arith.addf %14, %22 : vector<16x128xf32>
    %cst_7 = arith.constant 0.000000e+00 : f32
    %24 = vector.broadcast %cst_7 : f32 to vector<16x128xf32>
    %25 = arith.subf %24, %23 : vector<16x128xf32>
    %26 = vector.shape_cast %25 : vector<16x128xf32> to vector<1x16x128xf32>
    %cst_8 = arith.constant dense<0.000000e+00> : vector<1xf32>
    %27 = vector.multi_reduction <add>, %26, %cst_8 [1, 2] : vector<1x16x128xf32> to vector<1xf32>
    %28 = vector.shape_cast %27 : vector<1xf32> to vector<1x1x1xf32>
    %29 = vector.extract %28[0, 0, 0] : f32 from vector<1x1x1xf32>
    %c4_i32 = arith.constant 4 : i32
    %30 = tpu.dynamic_rotate %10 by %c4_i32 dim 1 : vector<16x128xf32>, i32 -> vector<16x128xf32>
    %31 = arith.addf %10, %30 : vector<16x128xf32>
    %c8_i32 = arith.constant 8 : i32
    %32 = tpu.dynamic_rotate %31 by %c8_i32 dim 1 : vector<16x128xf32>, i32 -> vector<16x128xf32>
    %33 = arith.addf %31, %32 : vector<16x128xf32>
    %c16_i32 = arith.constant 16 : i32
    %34 = tpu.dynamic_rotate %33 by %c16_i32 dim 1 : vector<16x128xf32>, i32 -> vector<16x128xf32>
    %35 = arith.addf %33, %34 : vector<16x128xf32>
    %c32_i32 = arith.constant 32 : i32
    %36 = tpu.dynamic_rotate %35 by %c32_i32 dim 1 : vector<16x128xf32>, i32 -> vector<16x128xf32>
    %37 = arith.addf %35, %36 : vector<16x128xf32>
    %c64_i32 = arith.constant 64 : i32
    %38 = tpu.dynamic_rotate %37 by %c64_i32 dim 1 : vector<16x128xf32>, i32 -> vector<16x128xf32>
    %39 = arith.addf %37, %38 : vector<16x128xf32>
    %c4_i32_9 = arith.constant 4 : i32
    %40 = vector.broadcast %c4_i32_9 : i32 to vector<1x128xi32>
    %41 = arith.cmpi slt, %2, %40 : vector<1x128xi32>
    %cst_10 = arith.constant dense<0.000000e+00> : vector<128xf32>
    %42 = vector.multi_reduction <add>, %39, %cst_10 [0] : vector<16x128xf32> to vector<128xf32>
    %43 = vector.shape_cast %42 : vector<128xf32> to vector<1x128xf32>
    %cst_11 = arith.constant 0.000000e+00 : f32
    %44 = vector.broadcast %cst_11 : f32 to vector<1x128xf32>
    %45 = arith.select %41, %43, %44 : vector<1x128xi1>, vector<1x128xf32>
    %c0_12 = arith.constant 0 : index
    %c0_13 = arith.constant 0 : index
    %46 = vector.load %arg2[%c0_12, %c0_13] : memref<16x16xf32, #tpu.memory_space<vmem>>, vector<4x16xf32>
    %c0_14 = arith.constant 0 : index
    %c0_15 = arith.constant 0 : index
    %47 = vector.load %arg3[%c0_14, %c0_15] : memref<128x32xf32, #tpu.memory_space<vmem>>, vector<128x32xf32>
    %c0_16 = arith.constant 0 : index
    %c0_17 = arith.constant 0 : index
    %48 = vector.load %arg5[%c0_16, %c0_17] : memref<16x4xbf16, #tpu.memory_space<vmem>>, vector<16x4xbf16>
    %cst_18 = arith.constant dense<0.000000e+00> : vector<4x128xf32>
    %49 = tpu.matmul %46, %0, %cst_18 {dimension_numbers = #tpu.dot_dimension_numbers<[1], [0], [0], [1], [0, 0, 1, 1], [], []>} : vector<4x16xf32>, vector<16x128xf32>, vector<4x128xf32> -> vector<4x128xf32>
    %cst_19 = arith.constant dense<0.000000e+00> : vector<4x32xf32>
    %50 = tpu.matmul %49, %47, %cst_19 {dimension_numbers = #tpu.dot_dimension_numbers<[1], [0], [0], [1], [0, 0, 1, 1], [], []>} : vector<4x128xf32>, vector<128x32xf32>, vector<4x32xf32> -> vector<4x32xf32>
    %cst_20 = arith.constant 0.000000e+00 : f32
    %51 = vector.broadcast %cst_20 : f32 to vector<4x32xf32>
    %52 = arith.cmpf ogt, %50, %51 : vector<4x32xf32>
    %cst_21 = arith.constant 1.000000e+00 : f32
    %cst_22 = arith.constant -1.000000e+00 : f32
    %53 = vector.broadcast %cst_21 : f32 to vector<4x32xf32>
    %54 = vector.broadcast %cst_22 : f32 to vector<4x32xf32>
    %55 = arith.select %52, %53, %54 : vector<4x32xi1>, vector<4x32xf32>
    %56 = arith.truncf %55 : vector<4x32xf32> to vector<4x32xbf16>
    %c0_23 = arith.constant 0 : index
    %c0_24 = arith.constant 0 : index
    %57 = vector.load %arg7[%c0_23, %c0_24] : memref<224x384xbf16, #tpu.memory_space<vmem>>, vector<32x384xbf16>
    %cst_25 = arith.constant dense<0.000000e+00> : vector<4x384xf32>
    %58 = tpu.matmul %56, %57, %cst_25 {dimension_numbers = #tpu.dot_dimension_numbers<[1], [0], [0], [1], [0, 0, 1, 1], [], []>} : vector<4x32xbf16>, vector<32x384xbf16>, vector<4x384xf32> -> vector<4x384xf32>
    %59 = arith.truncf %58 : vector<4x384xf32> to vector<4x384xbf16>
    %cst_26 = arith.constant dense<0.000000e+00> : vector<16x384xf32>
    %60 = tpu.matmul %48, %59, %cst_26 {dimension_numbers = #tpu.dot_dimension_numbers<[1], [0], [0], [1], [0, 0, 1, 1], [], []>} : vector<16x4xbf16>, vector<4x384xbf16>, vector<16x384xf32> -> vector<16x384xf32>
    %61 = vector.extract_strided_slice %60 {offsets = [0, 0], sizes = [16, 128], strides = [1, 1]} : vector<16x384xf32> to vector<16x128xf32>
    %62 = vector.extract_strided_slice %60 {offsets = [0, 128], sizes = [16, 128], strides = [1, 1]} : vector<16x384xf32> to vector<16x128xf32>
    %63 = vector.extract_strided_slice %60 {offsets = [0, 256], sizes = [16, 128], strides = [1, 1]} : vector<16x384xf32> to vector<16x128xf32>
    %c0_i32 = arith.constant 0 : i32
    %64 = vector.broadcast %c0_i32 : i32 to vector<16x128xi32>
    %65 = arith.cmpi eq, %1, %64 : vector<16x128xi32>
    %c1_i32 = arith.constant 1 : i32
    %66 = tpu.dynamic_rotate %61 by %c1_i32 dim 0 : vector<16x128xf32>, i32 -> vector<16x128xf32>
    %cst_27 = arith.constant 0.000000e+00 : f32
    %67 = vector.broadcast %cst_27 : f32 to vector<16x128xf32>
    %68 = arith.select %65, %67, %66 : vector<16x128xi1>, vector<16x128xf32>
    %c15_i32 = arith.constant 15 : i32
    %69 = vector.broadcast %c15_i32 : i32 to vector<16x128xi32>
    %70 = arith.cmpi eq, %1, %69 : vector<16x128xi32>
    %c15_i32_28 = arith.constant 15 : i32
    %71 = tpu.dynamic_rotate %63 by %c15_i32_28 dim 0 : vector<16x128xf32>, i32 -> vector<16x128xf32>
    %cst_29 = arith.constant 0.000000e+00 : f32
    %72 = vector.broadcast %cst_29 : f32 to vector<16x128xf32>
    %73 = arith.select %70, %72, %71 : vector<16x128xi1>, vector<16x128xf32>
    %74 = arith.addf %68, %62 : vector<16x128xf32>
    %75 = arith.addf %74, %73 : vector<16x128xf32>
    %c0_30 = arith.constant 0 : index
    %c0_31 = arith.constant 0 : index
    %76 = vector.load %arg8[%c0_30, %c0_31] : memref<3x128xf32, #tpu.memory_space<vmem>>, vector<1x128xf32>
    %77 = vector.broadcast %76 : vector<1x128xf32> to vector<16x128xf32>
    %78 = arith.addf %75, %77 : vector<16x128xf32>
    %79 = arith.addf %3, %78 : vector<16x128xf32>
    %80 = arith.subf %0, %78 : vector<16x128xf32>
    %81 = arith.subf %79, %0 : vector<16x128xf32>
    %82 = arith.mulf %81, %81 : vector<16x128xf32>
    %83 = vector.shape_cast %82 : vector<16x128xf32> to vector<1x16x128xf32>
    %cst_32 = arith.constant dense<0.000000e+00> : vector<1xf32>
    %84 = vector.multi_reduction <add>, %83, %cst_32 [1, 2] : vector<1x16x128xf32> to vector<1xf32>
    %85 = vector.shape_cast %84 : vector<1xf32> to vector<1x1x1xf32>
    %86 = vector.extract %85[0, 0, 0] : f32 from vector<1x1x1xf32>
    %c4_i32_33 = arith.constant 4 : i32
    %87 = vector.broadcast %c4_i32_33 : i32 to vector<1x128xi32>
    %88 = arith.cmpi eq, %2, %87 : vector<1x128xi32>
    %cst_34 = arith.constant 0.000000e+00 : f32
    %89 = vector.broadcast %86 : f32 to vector<1x128xf32>
    %90 = vector.broadcast %cst_34 : f32 to vector<1x128xf32>
    %91 = arith.select %88, %89, %90 : vector<1x128xi1>, vector<1x128xf32>
    %92 = arith.addf %45, %91 : vector<1x128xf32>
    %c5_i32 = arith.constant 5 : i32
    %93 = vector.broadcast %c5_i32 : i32 to vector<1x128xi32>
    %94 = arith.cmpi eq, %2, %93 : vector<1x128xi32>
    %cst_35 = arith.constant 0.000000e+00 : f32
    %95 = vector.broadcast %29 : f32 to vector<1x128xf32>
    %96 = vector.broadcast %cst_35 : f32 to vector<1x128xf32>
    %97 = arith.select %94, %95, %96 : vector<1x128xi1>, vector<1x128xf32>
    %98 = arith.addf %92, %97 : vector<1x128xf32>
    %cst_36 = arith.constant -4.000000e+00 : f32
    %99 = vector.broadcast %cst_36 : f32 to vector<16x128xf32>
    %100 = arith.mulf %99, %80 : vector<16x128xf32>
    %101 = arith.negf %100 : vector<16x128xf32>
    %102 = math.exp %101 : vector<16x128xf32>
    %cst_37 = arith.constant 1.000000e+00 : f32
    %103 = vector.broadcast %cst_37 : f32 to vector<16x128xf32>
    %104 = arith.addf %103, %102 : vector<16x128xf32>
    %105 = arith.divf %103, %104 : vector<16x128xf32>
    %cst_38 = arith.constant 9.99999993E-9 : f32
    %106 = vector.broadcast %cst_38 : f32 to vector<16x128xf32>
    %107 = arith.addf %105, %106 : vector<16x128xf32>
    %108 = math.log %107 : vector<16x128xf32>
    %109 = arith.mulf %105, %108 : vector<16x128xf32>
    %cst_39 = arith.constant 1.000000e+00 : f32
    %110 = vector.broadcast %cst_39 : f32 to vector<16x128xf32>
    %111 = arith.subf %110, %105 : vector<16x128xf32>
    %cst_40 = arith.constant 1.000000e+00 : f32
    %112 = vector.broadcast %cst_40 : f32 to vector<16x128xf32>
    %113 = arith.subf %112, %105 : vector<16x128xf32>
    %cst_41 = arith.constant 9.99999993E-9 : f32
    %114 = vector.broadcast %cst_41 : f32 to vector<16x128xf32>
    %115 = arith.addf %113, %114 : vector<16x128xf32>
    %116 = math.log %115 : vector<16x128xf32>
    %117 = arith.mulf %111, %116 : vector<16x128xf32>
    %118 = arith.addf %109, %117 : vector<16x128xf32>
    %cst_42 = arith.constant 0.000000e+00 : f32
    %119 = vector.broadcast %cst_42 : f32 to vector<16x128xf32>
    %120 = arith.subf %119, %118 : vector<16x128xf32>
    %121 = vector.shape_cast %120 : vector<16x128xf32> to vector<1x16x128xf32>
    %cst_43 = arith.constant dense<0.000000e+00> : vector<1xf32>
    %122 = vector.multi_reduction <add>, %121, %cst_43 [1, 2] : vector<1x16x128xf32> to vector<1xf32>
    %123 = vector.shape_cast %122 : vector<1xf32> to vector<1x1x1xf32>
    %124 = vector.extract %123[0, 0, 0] : f32 from vector<1x1x1xf32>
    %c4_i32_44 = arith.constant 4 : i32
    %125 = tpu.dynamic_rotate %105 by %c4_i32_44 dim 1 : vector<16x128xf32>, i32 -> vector<16x128xf32>
    %126 = arith.addf %105, %125 : vector<16x128xf32>
    %c8_i32_45 = arith.constant 8 : i32
    %127 = tpu.dynamic_rotate %126 by %c8_i32_45 dim 1 : vector<16x128xf32>, i32 -> vector<16x128xf32>
    %128 = arith.addf %126, %127 : vector<16x128xf32>
    %c16_i32_46 = arith.constant 16 : i32
    %129 = tpu.dynamic_rotate %128 by %c16_i32_46 dim 1 : vector<16x128xf32>, i32 -> vector<16x128xf32>
    %130 = arith.addf %128, %129 : vector<16x128xf32>
    %c32_i32_47 = arith.constant 32 : i32
    %131 = tpu.dynamic_rotate %130 by %c32_i32_47 dim 1 : vector<16x128xf32>, i32 -> vector<16x128xf32>
    %132 = arith.addf %130, %131 : vector<16x128xf32>
    %c64_i32_48 = arith.constant 64 : i32
    %133 = tpu.dynamic_rotate %132 by %c64_i32_48 dim 1 : vector<16x128xf32>, i32 -> vector<16x128xf32>
    %134 = arith.addf %132, %133 : vector<16x128xf32>
    %c4_i32_49 = arith.constant 4 : i32
    %135 = vector.broadcast %c4_i32_49 : i32 to vector<1x128xi32>
    %136 = arith.cmpi slt, %2, %135 : vector<1x128xi32>
    %cst_50 = arith.constant dense<0.000000e+00> : vector<128xf32>
    %137 = vector.multi_reduction <add>, %134, %cst_50 [0] : vector<16x128xf32> to vector<128xf32>
    %138 = vector.shape_cast %137 : vector<128xf32> to vector<1x128xf32>
    %cst_51 = arith.constant 0.000000e+00 : f32
    %139 = vector.broadcast %cst_51 : f32 to vector<1x128xf32>
    %140 = arith.select %136, %138, %139 : vector<1x128xi1>, vector<1x128xf32>
    %c8 = arith.constant 8 : index
    %c0_52 = arith.constant 0 : index
    %141 = vector.load %arg2[%c8, %c0_52] : memref<16x16xf32, #tpu.memory_space<vmem>>, vector<8x16xf32>
    %c0_53 = arith.constant 0 : index
    %c0_54 = arith.constant 0 : index
    %142 = vector.load %arg4[%c0_53, %c0_54] : memref<128x64xf32, #tpu.memory_space<vmem>>, vector<128x64xf32>
    %c0_55 = arith.constant 0 : index
    %c0_56 = arith.constant 0 : index
    %143 = vector.load %arg6[%c0_55, %c0_56] : memref<16x8xbf16, #tpu.memory_space<vmem>>, vector<16x8xbf16>
    %cst_57 = arith.constant dense<0.000000e+00> : vector<8x128xf32>
    %144 = tpu.matmul %141, %80, %cst_57 {dimension_numbers = #tpu.dot_dimension_numbers<[1], [0], [0], [1], [0, 0, 1, 1], [], []>} : vector<8x16xf32>, vector<16x128xf32>, vector<8x128xf32> -> vector<8x128xf32>
    %cst_58 = arith.constant dense<0.000000e+00> : vector<8x64xf32>
    %145 = tpu.matmul %144, %142, %cst_58 {dimension_numbers = #tpu.dot_dimension_numbers<[1], [0], [0], [1], [0, 0, 1, 1], [], []>} : vector<8x128xf32>, vector<128x64xf32>, vector<8x64xf32> -> vector<8x64xf32>
    %cst_59 = arith.constant 0.000000e+00 : f32
    %146 = vector.broadcast %cst_59 : f32 to vector<8x64xf32>
    %147 = arith.cmpf ogt, %145, %146 : vector<8x64xf32>
    %cst_60 = arith.constant 1.000000e+00 : f32
    %cst_61 = arith.constant -1.000000e+00 : f32
    %148 = vector.broadcast %cst_60 : f32 to vector<8x64xf32>
    %149 = vector.broadcast %cst_61 : f32 to vector<8x64xf32>
    %150 = arith.select %147, %148, %149 : vector<8x64xi1>, vector<8x64xf32>
    %151 = arith.truncf %150 : vector<8x64xf32> to vector<8x64xbf16>
    %c32 = arith.constant 32 : index
    %c0_62 = arith.constant 0 : index
    %152 = vector.load %arg7[%c32, %c0_62] : memref<224x384xbf16, #tpu.memory_space<vmem>>, vector<64x384xbf16>
    %cst_63 = arith.constant dense<0.000000e+00> : vector<8x384xf32>
    %153 = tpu.matmul %151, %152, %cst_63 {dimension_numbers = #tpu.dot_dimension_numbers<[1], [0], [0], [1], [0, 0, 1, 1], [], []>} : vector<8x64xbf16>, vector<64x384xbf16>, vector<8x384xf32> -> vector<8x384xf32>
    %154 = arith.truncf %153 : vector<8x384xf32> to vector<8x384xbf16>
    %cst_64 = arith.constant dense<0.000000e+00> : vector<16x384xf32>
    %155 = tpu.matmul %143, %154, %cst_64 {dimension_numbers = #tpu.dot_dimension_numbers<[1], [0], [0], [1], [0, 0, 1, 1], [], []>} : vector<16x8xbf16>, vector<8x384xbf16>, vector<16x384xf32> -> vector<16x384xf32>
    %156 = vector.extract_strided_slice %155 {offsets = [0, 0], sizes = [16, 128], strides = [1, 1]} : vector<16x384xf32> to vector<16x128xf32>
    %157 = vector.extract_strided_slice %155 {offsets = [0, 128], sizes = [16, 128], strides = [1, 1]} : vector<16x384xf32> to vector<16x128xf32>
    %158 = vector.extract_strided_slice %155 {offsets = [0, 256], sizes = [16, 128], strides = [1, 1]} : vector<16x384xf32> to vector<16x128xf32>
    %c0_i32_65 = arith.constant 0 : i32
    %159 = vector.broadcast %c0_i32_65 : i32 to vector<16x128xi32>
    %160 = arith.cmpi eq, %1, %159 : vector<16x128xi32>
    %c1_i32_66 = arith.constant 1 : i32
    %161 = tpu.dynamic_rotate %156 by %c1_i32_66 dim 0 : vector<16x128xf32>, i32 -> vector<16x128xf32>
    %cst_67 = arith.constant 0.000000e+00 : f32
    %162 = vector.broadcast %cst_67 : f32 to vector<16x128xf32>
    %163 = arith.select %160, %162, %161 : vector<16x128xi1>, vector<16x128xf32>
    %c15_i32_68 = arith.constant 15 : i32
    %164 = vector.broadcast %c15_i32_68 : i32 to vector<16x128xi32>
    %165 = arith.cmpi eq, %1, %164 : vector<16x128xi32>
    %c15_i32_69 = arith.constant 15 : i32
    %166 = tpu.dynamic_rotate %158 by %c15_i32_69 dim 0 : vector<16x128xf32>, i32 -> vector<16x128xf32>
    %cst_70 = arith.constant 0.000000e+00 : f32
    %167 = vector.broadcast %cst_70 : f32 to vector<16x128xf32>
    %168 = arith.select %165, %167, %166 : vector<16x128xi1>, vector<16x128xf32>
    %169 = arith.addf %163, %157 : vector<16x128xf32>
    %170 = arith.addf %169, %168 : vector<16x128xf32>
    %c1 = arith.constant 1 : index
    %c0_71 = arith.constant 0 : index
    %171 = vector.load %arg8[%c1, %c0_71] : memref<3x128xf32, #tpu.memory_space<vmem>>, vector<1x128xf32>
    %172 = vector.broadcast %171 : vector<1x128xf32> to vector<16x128xf32>
    %173 = arith.addf %170, %172 : vector<16x128xf32>
    %174 = arith.addf %79, %173 : vector<16x128xf32>
    %175 = arith.subf %80, %173 : vector<16x128xf32>
    %176 = arith.subf %174, %0 : vector<16x128xf32>
    %177 = arith.mulf %176, %176 : vector<16x128xf32>
    %178 = vector.shape_cast %177 : vector<16x128xf32> to vector<1x16x128xf32>
    %cst_72 = arith.constant dense<0.000000e+00> : vector<1xf32>
    %179 = vector.multi_reduction <add>, %178, %cst_72 [1, 2] : vector<1x16x128xf32> to vector<1xf32>
    %180 = vector.shape_cast %179 : vector<1xf32> to vector<1x1x1xf32>
    %181 = vector.extract %180[0, 0, 0] : f32 from vector<1x1x1xf32>
    %c4_i32_73 = arith.constant 4 : i32
    %182 = vector.broadcast %c4_i32_73 : i32 to vector<1x128xi32>
    %183 = arith.cmpi eq, %2, %182 : vector<1x128xi32>
    %cst_74 = arith.constant 0.000000e+00 : f32
    %184 = vector.broadcast %181 : f32 to vector<1x128xf32>
    %185 = vector.broadcast %cst_74 : f32 to vector<1x128xf32>
    %186 = arith.select %183, %184, %185 : vector<1x128xi1>, vector<1x128xf32>
    %187 = arith.addf %140, %186 : vector<1x128xf32>
    %c5_i32_75 = arith.constant 5 : i32
    %188 = vector.broadcast %c5_i32_75 : i32 to vector<1x128xi32>
    %189 = arith.cmpi eq, %2, %188 : vector<1x128xi32>
    %cst_76 = arith.constant 0.000000e+00 : f32
    %190 = vector.broadcast %124 : f32 to vector<1x128xf32>
    %191 = vector.broadcast %cst_76 : f32 to vector<1x128xf32>
    %192 = arith.select %189, %190, %191 : vector<1x128xi1>, vector<1x128xf32>
    %193 = arith.addf %187, %192 : vector<1x128xf32>
    %cst_77 = arith.constant -4.000000e+00 : f32
    %194 = vector.broadcast %cst_77 : f32 to vector<16x128xf32>
    %195 = arith.mulf %194, %175 : vector<16x128xf32>
    %196 = arith.negf %195 : vector<16x128xf32>
    %197 = math.exp %196 : vector<16x128xf32>
    %cst_78 = arith.constant 1.000000e+00 : f32
    %198 = vector.broadcast %cst_78 : f32 to vector<16x128xf32>
    %199 = arith.addf %198, %197 : vector<16x128xf32>
    %200 = arith.divf %198, %199 : vector<16x128xf32>
    %cst_79 = arith.constant 9.99999993E-9 : f32
    %201 = vector.broadcast %cst_79 : f32 to vector<16x128xf32>
    %202 = arith.addf %200, %201 : vector<16x128xf32>
    %203 = math.log %202 : vector<16x128xf32>
    %204 = arith.mulf %200, %203 : vector<16x128xf32>
    %cst_80 = arith.constant 1.000000e+00 : f32
    %205 = vector.broadcast %cst_80 : f32 to vector<16x128xf32>
    %206 = arith.subf %205, %200 : vector<16x128xf32>
    %cst_81 = arith.constant 1.000000e+00 : f32
    %207 = vector.broadcast %cst_81 : f32 to vector<16x128xf32>
    %208 = arith.subf %207, %200 : vector<16x128xf32>
    %cst_82 = arith.constant 9.99999993E-9 : f32
    %209 = vector.broadcast %cst_82 : f32 to vector<16x128xf32>
    %210 = arith.addf %208, %209 : vector<16x128xf32>
    %211 = math.log %210 : vector<16x128xf32>
    %212 = arith.mulf %206, %211 : vector<16x128xf32>
    %213 = arith.addf %204, %212 : vector<16x128xf32>
    %cst_83 = arith.constant 0.000000e+00 : f32
    %214 = vector.broadcast %cst_83 : f32 to vector<16x128xf32>
    %215 = arith.subf %214, %213 : vector<16x128xf32>
    %216 = vector.shape_cast %215 : vector<16x128xf32> to vector<1x16x128xf32>
    %cst_84 = arith.constant dense<0.000000e+00> : vector<1xf32>
    %217 = vector.multi_reduction <add>, %216, %cst_84 [1, 2] : vector<1x16x128xf32> to vector<1xf32>
    %218 = vector.shape_cast %217 : vector<1xf32> to vector<1x1x1xf32>
    %219 = vector.extract %218[0, 0, 0] : f32 from vector<1x1x1xf32>
    %c4_i32_85 = arith.constant 4 : i32
    %220 = tpu.dynamic_rotate %200 by %c4_i32_85 dim 1 : vector<16x128xf32>, i32 -> vector<16x128xf32>
    %221 = arith.addf %200, %220 : vector<16x128xf32>
    %c8_i32_86 = arith.constant 8 : i32
    %222 = tpu.dynamic_rotate %221 by %c8_i32_86 dim 1 : vector<16x128xf32>, i32 -> vector<16x128xf32>
    %223 = arith.addf %221, %222 : vector<16x128xf32>
    %c16_i32_87 = arith.constant 16 : i32
    %224 = tpu.dynamic_rotate %223 by %c16_i32_87 dim 1 : vector<16x128xf32>, i32 -> vector<16x128xf32>
    %225 = arith.addf %223, %224 : vector<16x128xf32>
    %c32_i32_88 = arith.constant 32 : i32
    %226 = tpu.dynamic_rotate %225 by %c32_i32_88 dim 1 : vector<16x128xf32>, i32 -> vector<16x128xf32>
    %227 = arith.addf %225, %226 : vector<16x128xf32>
    %c64_i32_89 = arith.constant 64 : i32
    %228 = tpu.dynamic_rotate %227 by %c64_i32_89 dim 1 : vector<16x128xf32>, i32 -> vector<16x128xf32>
    %229 = arith.addf %227, %228 : vector<16x128xf32>
    %c4_i32_90 = arith.constant 4 : i32
    %230 = vector.broadcast %c4_i32_90 : i32 to vector<1x128xi32>
    %231 = arith.cmpi slt, %2, %230 : vector<1x128xi32>
    %cst_91 = arith.constant dense<0.000000e+00> : vector<128xf32>
    %232 = vector.multi_reduction <add>, %229, %cst_91 [0] : vector<16x128xf32> to vector<128xf32>
    %233 = vector.shape_cast %232 : vector<128xf32> to vector<1x128xf32>
    %cst_92 = arith.constant 0.000000e+00 : f32
    %234 = vector.broadcast %cst_92 : f32 to vector<1x128xf32>
    %235 = arith.select %231, %233, %234 : vector<1x128xi1>, vector<1x128xf32>
    %cst_93 = arith.constant 0.000000e+00 : f32
    %236 = vector.broadcast %cst_93 : f32 to vector<16x128xf32>
    %237 = arith.cmpf ogt, %175, %236 : vector<16x128xf32>
    %cst_94 = arith.constant 1.000000e+00 : f32
    %cst_95 = arith.constant -1.000000e+00 : f32
    %238 = vector.broadcast %cst_94 : f32 to vector<16x128xf32>
    %239 = vector.broadcast %cst_95 : f32 to vector<16x128xf32>
    %240 = arith.select %237, %238, %239 : vector<16x128xi1>, vector<16x128xf32>
    %241 = arith.truncf %240 : vector<16x128xf32> to vector<16x128xbf16>
    %c96 = arith.constant 96 : index
    %c0_96 = arith.constant 0 : index
    %242 = vector.load %arg7[%c96, %c0_96] : memref<224x384xbf16, #tpu.memory_space<vmem>>, vector<128x384xbf16>
    %cst_97 = arith.constant dense<0.000000e+00> : vector<16x384xf32>
    %243 = tpu.matmul %241, %242, %cst_97 {dimension_numbers = #tpu.dot_dimension_numbers<[1], [0], [0], [1], [0, 0, 1, 1], [], []>} : vector<16x128xbf16>, vector<128x384xbf16>, vector<16x384xf32> -> vector<16x384xf32>
    %244 = vector.extract_strided_slice %243 {offsets = [0, 0], sizes = [16, 128], strides = [1, 1]} : vector<16x384xf32> to vector<16x128xf32>
    %245 = vector.extract_strided_slice %243 {offsets = [0, 128], sizes = [16, 128], strides = [1, 1]} : vector<16x384xf32> to vector<16x128xf32>
    %246 = vector.extract_strided_slice %243 {offsets = [0, 256], sizes = [16, 128], strides = [1, 1]} : vector<16x384xf32> to vector<16x128xf32>
    %c0_i32_98 = arith.constant 0 : i32
    %247 = vector.broadcast %c0_i32_98 : i32 to vector<16x128xi32>
    %248 = arith.cmpi eq, %1, %247 : vector<16x128xi32>
    %c1_i32_99 = arith.constant 1 : i32
    %249 = tpu.dynamic_rotate %244 by %c1_i32_99 dim 0 : vector<16x128xf32>, i32 -> vector<16x128xf32>
    %cst_100 = arith.constant 0.000000e+00 : f32
    %250 = vector.broadcast %cst_100 : f32 to vector<16x128xf32>
    %251 = arith.select %248, %250, %249 : vector<16x128xi1>, vector<16x128xf32>
    %c15_i32_101 = arith.constant 15 : i32
    %252 = vector.broadcast %c15_i32_101 : i32 to vector<16x128xi32>
    %253 = arith.cmpi eq, %1, %252 : vector<16x128xi32>
    %c15_i32_102 = arith.constant 15 : i32
    %254 = tpu.dynamic_rotate %246 by %c15_i32_102 dim 0 : vector<16x128xf32>, i32 -> vector<16x128xf32>
    %cst_103 = arith.constant 0.000000e+00 : f32
    %255 = vector.broadcast %cst_103 : f32 to vector<16x128xf32>
    %256 = arith.select %253, %255, %254 : vector<16x128xi1>, vector<16x128xf32>
    %257 = arith.addf %251, %245 : vector<16x128xf32>
    %258 = arith.addf %257, %256 : vector<16x128xf32>
    %c2 = arith.constant 2 : index
    %c0_104 = arith.constant 0 : index
    %259 = vector.load %arg8[%c2, %c0_104] : memref<3x128xf32, #tpu.memory_space<vmem>>, vector<1x128xf32>
    %260 = vector.broadcast %259 : vector<1x128xf32> to vector<16x128xf32>
    %261 = arith.addf %258, %260 : vector<16x128xf32>
    %262 = arith.addf %174, %261 : vector<16x128xf32>
    %263 = arith.subf %262, %0 : vector<16x128xf32>
    %264 = arith.mulf %263, %263 : vector<16x128xf32>
    %265 = vector.shape_cast %264 : vector<16x128xf32> to vector<1x16x128xf32>
    %cst_105 = arith.constant dense<0.000000e+00> : vector<1xf32>
    %266 = vector.multi_reduction <add>, %265, %cst_105 [1, 2] : vector<1x16x128xf32> to vector<1xf32>
    %267 = vector.shape_cast %266 : vector<1xf32> to vector<1x1x1xf32>
    %268 = vector.extract %267[0, 0, 0] : f32 from vector<1x1x1xf32>
    %c4_i32_106 = arith.constant 4 : i32
    %269 = vector.broadcast %c4_i32_106 : i32 to vector<1x128xi32>
    %270 = arith.cmpi eq, %2, %269 : vector<1x128xi32>
    %cst_107 = arith.constant 0.000000e+00 : f32
    %271 = vector.broadcast %268 : f32 to vector<1x128xf32>
    %272 = vector.broadcast %cst_107 : f32 to vector<1x128xf32>
    %273 = arith.select %270, %271, %272 : vector<1x128xi1>, vector<1x128xf32>
    %274 = arith.addf %235, %273 : vector<1x128xf32>
    %c5_i32_108 = arith.constant 5 : i32
    %275 = vector.broadcast %c5_i32_108 : i32 to vector<1x128xi32>
    %276 = arith.cmpi eq, %2, %275 : vector<1x128xi32>
    %cst_109 = arith.constant 0.000000e+00 : f32
    %277 = vector.broadcast %219 : f32 to vector<1x128xf32>
    %278 = vector.broadcast %cst_109 : f32 to vector<1x128xf32>
    %279 = arith.select %276, %277, %278 : vector<1x128xi1>, vector<1x128xf32>
    %280 = arith.addf %274, %279 : vector<1x128xf32>
    %c0_110 = arith.constant 0 : index
    %c0_111 = arith.constant 0 : index
    %281 = vector.load %arg9[%c0_110, %c0_111] : memref<16x128xf32, #tpu.memory_space<vmem>>, vector<16x128xf32>
    tpu.vector_store %arg9[%c0_110, %c0_111], %262 {strides = array<i32>} : memref<16x128xf32, #tpu.memory_space<vmem>>, vector<16x128xf32>,
    %282 = tpu.concatenate %98, %193, %280 in 0 : vector<1x128xf32>, vector<1x128xf32>, vector<1x128xf32> -> vector<3x128xf32>
    %c0_112 = arith.constant 0 : index
    %c0_113 = arith.constant 0 : index
    %283 = vector.load %arg10[%c0_112, %c0_113] : memref<3x128xf32, #tpu.memory_space<vmem>>, vector<3x128xf32>
    tpu.vector_store %arg10[%c0_112, %c0_113], %282 {strides = array<i32>} : memref<3x128xf32, #tpu.memory_space<vmem>>, vector<3x128xf32>,
    return
  }
  func.func @transform_0(%arg0: i32) -> (i32, i32) {
    %c0_i32 = arith.constant 0 : i32
    %c0_i32_0 = arith.constant 0 : i32
    return %c0_i32, %arg0 : i32, i32
  }
  func.func @transform_1(%arg0: i32) -> (i32, i32) {
    %c0_i32 = arith.constant 0 : i32
    %c0_i32_0 = arith.constant 0 : i32
    %c0_i32_1 = arith.constant 0 : i32
    return %c0_i32, %c0_i32_0 : i32, i32
  }
  func.func @transform_2(%arg0: i32) -> (i32, i32) {
    %c0_i32 = arith.constant 0 : i32
    %c0_i32_0 = arith.constant 0 : i32
    %c0_i32_1 = arith.constant 0 : i32
    return %c0_i32, %c0_i32_0 : i32, i32
  }
  func.func @transform_3(%arg0: i32) -> (i32, i32) {
    %c0_i32 = arith.constant 0 : i32
    %c0_i32_0 = arith.constant 0 : i32
    %c0_i32_1 = arith.constant 0 : i32
    return %c0_i32, %c0_i32_0 : i32, i32
  }
  func.func @transform_4(%arg0: i32) -> (i32, i32) {
    %c0_i32 = arith.constant 0 : i32
    %c0_i32_0 = arith.constant 0 : i32
    %c0_i32_1 = arith.constant 0 : i32
    return %c0_i32, %c0_i32_0 : i32, i32
  }
  func.func @transform_5(%arg0: i32) -> (i32, i32) {
    %c0_i32 = arith.constant 0 : i32
    %c0_i32_0 = arith.constant 0 : i32
    %c0_i32_1 = arith.constant 0 : i32
    return %c0_i32, %c0_i32_0 : i32, i32
  }
  func.func @transform_6(%arg0: i32) -> (i32, i32) {
    %c0_i32 = arith.constant 0 : i32
    %c0_i32_0 = arith.constant 0 : i32
    %c0_i32_1 = arith.constant 0 : i32
    return %c0_i32, %c0_i32_0 : i32, i32
  }
  func.func @transform_7(%arg0: i32) -> (i32, i32) {
    %c0_i32 = arith.constant 0 : i32
    %c0_i32_0 = arith.constant 0 : i32
    %c0_i32_1 = arith.constant 0 : i32
    return %c0_i32, %c0_i32_0 : i32, i32
  }
  func.func @transform_8(%arg0: i32) -> (i32, i32) {
    %c0_i32 = arith.constant 0 : i32
    %c0_i32_0 = arith.constant 0 : i32
    return %c0_i32, %arg0 : i32, i32
  }
  func.func @transform_9(%arg0: i32) -> (i32, i32) {
    %c0_i32 = arith.constant 0 : i32
    %c0_i32_0 = arith.constant 0 : i32
    return %c0_i32, %arg0 : i32, i32
  }
}

</mosaic_0001>

<bundles_post_ra>
// kernel: _lfq_forward_jit.1
= control target key start
LH: loop header
LB: loop body
LE: loop exit
PB: predicated region body
PF: predicated region fallthrough
CT: control target
= control target key end

     0   :  { %s2572_s30 = smov 0   ;;  %s2574_s10 = smov 0   ;;  %s3187_s0 = inlined_call_operand.vmem [shape: f32[16,256], index: 0, kind: input, shape index: {}]   ;;  %s3188_s1 = inlined_call_operand.vmem [shape: f32[16,16], index: 1, kind: input, shape index: {}]   ;;  %s3189_s2 = inlined_call_operand.vmem [shape: f32[128,32], index: 2, kind: input, shape index: {}]   ;;  %s3190_s3 = inlined_call_operand.vmem [shape: f32[128,64], index: 3, kind: input, shape index: {}]   ;;  %s3191_s4 = inlined_call_operand.vmem [shape: bf16[16,4], index: 4, kind: input, shape index: {}]   ;;  %s3192_s5 = inlined_call_operand.vmem [shape: bf16[16,8], index: 5, kind: input, shape index: {}]   ;;  %s3193_s6 = inlined_call_operand.vmem [shape: bf16[224,384], index: 6, kind: input, shape index: {}]   ;;  %s3194_s7 = inlined_call_operand.vmem [shape: f32[3,128], index: 7, kind: input, shape index: {}]   ;;  %s3195_s8 = inlined_call_operand.vmem [shape: f32[16,256], index: 8, kind: output, shape index: {0}]   ;;  %s3196_s9 = inlined_call_operand.vmem [shape: f32[3,256], index: 9, kind: output, shape index: {1}]  }
   0x1   :  { %s2576_s11 = smov 0  }
   0x2 LB: > { %s2585_s12 = sadd.s32 4294967295, %s2510_s11   ;;  %s2587_s13 = sadd.s32 1, %s2510_s11   ;;  %s2510_s11 = sphi %s2576_s11, %s3200_s11   ;;  %s2506_s10 = sphi %s2574_s10, %s3199_s10   ;;  %s2502_s30 = sphi %s2572_s30, %s3198_s30  }
   0x3   : > { %s24_s14 = ssub.s32 %s2510_s11, %s2587_s13  ;;  %s27_s15 = sadd.s32 1, %s2506_s10 }
   0x4   : > { %p25_p0 = scmp.eq.s32.totalorder %s24_s14, 0  ;;  %p34_p1 = scmp.ne.s32.totalorder %s2506_s10, %s2502_s30 }
   0x5   : > { %p35_p2 = scmp.eq.s32.totalorder %s2510_s11, 0  ;;  %p211_p3 = scmp.eq.s32.totalorder %s2585_s12, 1 }
   0x6   : > { %s2595_s16 = scalar_select %p25_p0, %s2506_s10, %s27_s15  }
   0x7   : > { %p36_p4 = por %p35_p2, %p34_p1  ;;  %p2597_p5 = por %p211_p3, %p34_p1 }
   0x8   : > { %p2007_p6 = scmp.ge.s32.totalorder %s2510_s11, 2 }
   0xa   : > { %280 = sbr.rel (%p2007_p6) target bundleno = 24 (0x18), region = 44 }
  0x11   : > { %283 = sbr.rel (!%p36_p4) target bundleno = 24 (0x18), region = 48  ;;  %s285_s18 = sand.u32 (%p36_p4), 1, %s2506_s10  }
  0x12   : > { %s2009_s19 = sshll.u32 (%p36_p4), %s2510_s11, 3  ;;  %s2008_s20 = sshll.u32 (%p36_p4), %s285_s18, 4 }
  0x13   : > { %s289_s23 = scalar_lea.vmem (%p36_p4), %s3187_s0, %s2009_s19  ;;  %s287_s24 = scalar_lea.vmem (%p36_p4), [#allocation2], %s2008_s20 }
  0x14   : > { %v319_v0 = vld [vmem:[%s289_s23] sm:$0xff] (%p36_p4)  ;;  %v321_v1 = vld [vmem:[%s289_s23 + $0x10] sm:$0xff] (%p36_p4) }
  0x15   : > { %320 = vst [vmem:[%s287_s24] sm:$0xff] (%p36_p4), %v319_v0  ;;  %322 = vst [vmem:[%s287_s24 + $0x8] sm:$0xff] (%p36_p4), %v321_v1 }
  0x18 PF: > { %p2010_p7 = scmp.ge.s32.totalorder %s2510_s11, 1  ;;  %p327_p8 = scmp.lt.s32.totalorder %s2510_s11, 3 }
  0x1a   : > { %p328_p9 = pnand %p2010_p7, %p327_p8 }
  0x1b   : > { %s334_s25 = sand.u32 (!%p328_p9), 1, %s2502_s30   ;;  %v2512_v2 = vmov (!%p328_p9), 0.0|0.0   ;;  %vm2513_vm0 = vmmov (!%p328_p9), 0   ;;  %v2514_v3 = vmov (!%p328_p9), 0.0   ;;  %v470_v4 = vld [vmem:[%s3189_s2] sm:$0xff] (!%p328_p9)  ;;  %v471_v5 = vld [vmem:[%s3189_s2 + $0x8] sm:$0xff] (!%p328_p9) }
  0x1c   : > { %331 = sbr.rel (%p328_p9) target bundleno = 2451 (0x993), region = 86  ;;  %2280 = vmatprep.subr.bf16.mxu0 (!%p328_p9), %v2512_v2  ;;  %s2607_s26 = sshll.u32 (!%p328_p9), %s334_s25, 4  ;;  %2148 = vmatprep.mubr.msk.f32.mxu0 (!%p328_p9), %vm2513_vm0, %v2514_v3  ;;  %v472_v6 = vld [vmem:[%s3189_s2 + $0x10] sm:$0xff] (!%p328_p9)  ;;  %v2284_v7 = vpack.c.bf16 (!%p328_p9), %v471_v5, %v470_v4  ;;  %v473_v8 = vld [vmem:[%s3189_s2 + $0x18] sm:$0xff] (!%p328_p9)  ;;  %v474_v13 = vld [vmem:[%s3189_s2 + $0x20] sm:$0xff] (!%p328_p9)  ;;  %vm488_vm1 = vcmask (!%p328_p9), 130048  }
  0x1d   : > { %2283 = vmatprep.subr.bf16.mxu1 (!%p328_p9), %v2512_v2  ;;  %2183 = vmatprep.mubr.msk.f32.mxu1 (!%p328_p9), %vm2513_vm0, %v2514_v3  ;;  %s2627_s19 = scalar_lea.vmem (!%p328_p9), [#allocation2], %s2607_s26  ;;  %v2287_v12 = vpack.c.bf16 (!%p328_p9), %v473_v8, %v472_v6  ;;  %v475_v14 = vld [vmem:[%s3189_s2 + $0x28] sm:$0xff] (!%p328_p9)  ;;  %v469_v15 = vld [vmem:[%s3188_s1] sm:$0xf] (!%p328_p9)  ;;  %v476_v16 = vld [vmem:[%s3189_s2 + $0x30] sm:$0xff] (!%p328_p9)  ;;  %v2515_v38 = vmov (!%p328_p9), 0   ;;  %v379_v8 = vlaneseq (!%p328_p9) }
  0x1e   : > { %v2630_v9 = vld [vmem:[%s2627_s19] sm:$0xff] (!%p328_p9)  ;;  %v2633_v10 = vld [vmem:[%s2627_s19 + $0x8] sm:$0xff] (!%p328_p9)  ;;  %2285 = vmatpush3.bf16.msra.mxu1 (!%p328_p9), %v2284_v7  ;;  %v2290_v18 = vpack.c.bf16 (!%p328_p9), %v475_v14, %v474_v13  ;;  %v2516_v41 = vmov (!%p328_p9), -1.0   ;;  %vm675_vm3 = vcmask (!%p328_p9), 261120   ;;  %vm772_vm4 = vcmask (!%p328_p9), 1041408   ;;  %s2517_s15 = smov (!%p328_p9), 4  }
  0x1f   : > { %v2281_v11 = vpack.c.bf16 (!%p328_p9), %v2633_v10, %v2630_v9  ;;  %2286 = vmatprep.subr.bf16.mxu1 (!%p328_p9), %v2512_v2  ;;  %v477_v17 = vld [vmem:[%s3189_s2 + $0x38] sm:$0xff] (!%p328_p9)  ;;  %v478_v19 = vld [vmem:[%s3189_s2 + $0x40] sm:$0xff] (!%p328_p9)  ;;  %v479_v20 = vld [vmem:[%s3189_s2 + $0x48] sm:$0xff] (!%p328_p9)  ;;  %vm768_vm5 = vcmask (!%p328_p9), 31744   ;;  %v2014_v60 = vmul.f32 (!%p328_p9), 4.0, %v2630_v9  ;;  %v2015_v61 = vmul.f32 (!%p328_p9), 4.0, %v2633_v10 }
  0x20   : > { %v2293_v21 = vpack.c.bf16 (!%p328_p9), %v477_v17, %v476_v16  ;;  %v480_v22 = vld [vmem:[%s3189_s2 + $0x50] sm:$0xff] (!%p328_p9)  ;;  %v481_v23 = vld [vmem:[%s3189_s2 + $0x58] sm:$0xff] (!%p328_p9)  ;;  %v2296_v24 = vpack.c.bf16 (!%p328_p9), %v479_v20, %v478_v19  ;;  %v482_v25 = vld [vmem:[%s3189_s2 + $0x60] sm:$0xff] (!%p328_p9)  ;;  %vm1250_vm11 = vcmask (!%p328_p9), 523264   ;;  %vm1347_vm12 = vcmask (!%p328_p9), 1043456   ;;  %s2518_s28 = smov (!%p328_p9), 8  }
  0x21   : > { %2282 = vmatpush3.bf16.msra.mxu0 (!%p328_p9), %v2281_v11  ;;  %v483_v26 = vld [vmem:[%s3189_s2 + $0x68] sm:$0xff] (!%p328_p9)  ;;  %v2299_v27 = vpack.c.bf16 (!%p328_p9), %v481_v23, %v480_v22  ;;  %v484_v28 = vld [vmem:[%s3189_s2 + $0x70] sm:$0xff] (!%p328_p9)  ;;  %v485_v29 = vld [vmem:[%s3189_s2 + $0x78] sm:$0xff] (!%p328_p9)  ;;  %v388_v62 = vmul.f32 (!%p328_p9), 1.442695, %v2014_v60  ;;  %v2735_v11 = vshrl.u32 (!%p328_p9), %v379_v8, 7 }
  0x22   : > { %2288 = vmatpush3.bf16.msra.mxu1 (!%p328_p9), %v2287_v12  ;;  %v2302_v30 = vpack.c.bf16 (!%p328_p9), %v483_v26, %v482_v25  ;;  %v2305_v31 = vpack.c.bf16 (!%p328_p9), %v485_v29, %v484_v28  ;;  %v2380_v32 = vld [vmem:[%s3193_s6] ss:$12 sps:$4 sm:$0xff] (!%p328_p9)   ;;  %v2382_v33 = vld [vmem:[%s3193_s6 + $0x4] ss:$12 sps:$4 sm:$0xff] (!%p328_p9)   ;;  %v2385_v36 = vld [vmem:[%s3193_s6 + $0x1c] ss:$12 sps:$4 sm:$0xff] (!%p328_p9)  }
  0x23   : > { %2289 = vmatprep.subr.bf16.mxu1 %v2512_v2  ;;  %679 = vmatprep.subr.bf16.mxu0 %v2382_v33  ;;  %v2383_v37 = vld [vmem:[%s3193_s6 + $0x18] ss:$12 sps:$4 sm:$0xff]   ;;  %v2386_v43 = vld [vmem:[%s3193_s6 + $0x8] ss:$12 sps:$4 sm:$0xff]   ;;  %v2387_v45 = vld [vmem:[%s3193_s6 + $0x20] ss:$12 sps:$4 sm:$0xff]   ;;  %2438 = vpow2.f32 %v388_v62 }
  0x24   : > { %2149 = vmatmul.mubr.msk.f32.vlgmr.msra.gmra.mrb[0].mxu0 %vm488_vm1, %v469_v15  ;;  %v2388_v53 = vld [vmem:[%s3191_s4] sm:$0xff]   ;;  %v390_v63 = vmul.f32 1.442695, %v2015_v61  ;;  %vm870_vm6 = vcmp.lt.s32.totalorder %v2735_v11, 1  ;;  %vm866_vm7 = vcmp.eq.s32.totalorder %v2735_v11, 0  ;;  %v2746_v23 = vadd.s32 8, %v2735_v11 }
  0x25   : > { %680 = vmatpush1.bf16.msra.mxu0 %v2380_v32  ;;  %711 = vmatprep.mubr.bf16.mxu0 %v2515_v38  ;;  %vm879_vm8 = vcmp.lt.s32.totalorder %v2735_v11, 7  ;;  %v2029_v32 = vld [vmem:[%s3194_s7] ss:$0 sm:$0xff]  ;;  %v1012_v60 = vld [vmem:[%s3190_s3 + $0x30] sm:$0xff]  ;;  %v1013_v61 = vld [vmem:[%s3190_s3 + $0x38] sm:$0xff]  ;;  %vm1343_vm13 = vcmask 64512  }
  0x26   : > { %2291 = vmatpush3.bf16.msra.mxu1 %v2290_v18  ;;  %681 = vmatprep.subr.bf16.mxu0 %v2385_v36  ;;  %2440 = vpow2.f32 %v390_v63  ;;  %vm876_vm9 = vcmp.eq.s32.totalorder %v2746_v23, 15  ;;  %v2320_v62 = vpack.c.bf16 %v1013_v61, %v1012_v60  ;;  %s3093_s11 = scalar_lea.vmem [#allocation3], %s2607_s26  ;;  %s2520_s30 = smov 32  }
  0x27   : > { %2292 = vmatprep.subr.bf16.mxu1 %v2512_v2  ;;  %s2521_s26 = smov 64   ;;  %p372_p10 = scmp.lt.s32.totalorder %s2585_s12, 1 }
  0x29   : > { %682 = vmatpush1.bf16.msra.mxu0 %v2383_v37  ;;  %s373_s24 = scalar_select %p372_p10, %s2585_s12, 1 }
  0x2a   : > { %2294 = vmatpush3.bf16.msra.mxu1 %v2293_v21  ;;  %2186 = vmatprep.subr.bf16.mxu0 %v2514_v3 }
  0x2b   : > { %2295 = vmatprep.subr.bf16.mxu1 %v2512_v2  ;;  %s2013_s25 = sshll.u32 %s373_s24, 2 }
  0x2d   : > { %v2439_v0 = vpop.eup %2438 }
  0x2e   : > { %2297 = vmatpush3.bf16.msra.mxu1 %v2296_v24  ;;  %v392_v1 = vadd.f32 1.0, %v2439_v0  ;;  %v1014_v0 = vld [vmem:[%s3190_s3 + $0x40] sm:$0xff] }
  0x2f   : > { %2298 = vmatprep.subr.bf16.mxu1 %v2512_v2 }
  0x30   : > { %v2441_v4 = vpop.eup %2440  ;;  %2442 = vrcp.f32 %v392_v1  ;;  %v1015_v1 = vld [vmem:[%s3190_s3 + $0x48] sm:$0xff] }
  0x31   : > { %v393_v5 = vadd.f32 1.0, %v2441_v4  ;;  %v2323_v4 = vpack.c.bf16 %v1015_v1, %v1014_v0  ;;  %v2413_v0 = vld [vmem:[%s3193_s6 + $0xb0] ss:$12 sps:$4 sm:$0xff]   ;;  %v2417_v1 = vld [vmem:[%s3193_s6 + $0xc8] ss:$12 sps:$4 sm:$0xff]  }
  0x32   : > { %2300 = vmatpush3.bf16.msra.mxu1 %v2299_v27 }
  0x33   : > { %2301 = vmatprep.subr.bf16.mxu1 %v2512_v2  ;;  %2444 = vrcp.f32 %v393_v5  ;;  %v1016_v5 = vld [vmem:[%s3190_s3 + $0x50] sm:$0xff] }
  0x36   : > { %2303 = vmatpush3.bf16.msra.mxu1 %v2302_v30 }
  0x37   : > { %2304 = vmatprep.subr.bf16.mxu1 %v2512_v2 }
  0x3a   : > { %2306 = vmatpush3.bf16.msra.mxu1 %v2305_v31  ;;  %v2726_v6 = vpop.eup %2442 }
  0x3b   : > { %2307 = vmatprep.subr.bf16.mxu1 %v2512_v2  ;;  %430 = vrot.lane.b32.xlu0 %v2726_v6, %s2517_s15 }
  0x3d   : > { %v2730_v7 = vpop.eup %2444 }
  0x3f   : > { %432 = vrot.lane.b32.xlu0 %v2730_v7, %s2517_s15 }
  0xf7   : > { %v558_v34 = vpop.f32.mrb[0].mxu0 }
  0xf8   : > { %v2150_v35 = vpop.f32.mrb[1].mxu0  ;;  %2184 = vmatmul.mubr.f32.vlgmr.msra.gmra.mrb[0].mxu1 %v558_v34 }
  0xf9   : > { %2204 = vmatprep.mubr.msk.f32.mxu1 %vm2513_vm0, %v2514_v3 }
 0x1cb   : > { %v628_v39 = vpop.f32.mrb[0].mxu1 }
 0x1cc   : > { %vm632_vm2 = vcmp.gt.f32.partialorder %v628_v39, 0.0  ;;  %v2185_v40 = vpop.f32.mrb[1].mxu1 }
 0x1cd   : > { %v633_v42 = vsel %vm632_vm2, 1.0, %v2516_v41 }
 0x1ce   : > { %v634_v44 = vpack.c.bf16 %v633_v42, %v633_v42 }
 0x1d0   : > { %2023 = vmatmul.mubr.msk.bf16.vlgmr.msra.gmra.mrb[4].mxu0 %vm675_vm3, %v634_v44 }
 0x1d1   : > { %2187 = vmatpush3.bf16.msra.mxu0 %v2386_v43  ;;  %2190 = vmatprep.mubr.msk.bf16.mxu0 %vm2513_vm0, %v2514_v3 }
 0x1d2   : > { %2188 = vmatprep.subr.bf16.mxu0 %v2514_v3 }
 0x1d5   : > { %2189 = vmatpush3.bf16.msra.mxu0 %v2387_v45 }
 0x1d8   : > { %2191 = vmatmul.mubr.msk.bf16.vlgmr.msra.gmra.mrb[8].mxu0 %vm675_vm3, %v634_v44  ;;  %vm1868_vm3 = vcmask 1040384  }
 0x1d9   : > { %814 = vmatprep.mubr.bf16.mxu0 %v2515_v38 }
 0x2a3   : > { %v713_v46 = vpop.f32.mrb[4].mxu0 }
 0x2a4   : > { %v760_v47 = vpack.c.bf16 %v713_v46, %v713_v46  ;;  %v715_v48 = vpop.f32.mrb[5].mxu0 }
 0x2a5   : > { %v761_v49 = vpack.c.bf16 %v715_v48, %v715_v48  ;;  %v717_v50 = vpop.f32.mrb[6].mxu0 }
 0x2a6   : > { %v774_v51 = vsel %vm772_vm4, %v760_v47, 0  ;;  %v718_v52 = vpop.f32.mrb[7].mxu0  ;;  %v1005_v47 = vld [vmem:[%s3188_s1 + $0x8] sm:$0xff]  ;;  %v1006_v50 = vld [vmem:[%s3190_s3] sm:$0xff] }
 0x2a7   : > { %2026 = vmatprep.subr.msk.bf16.mxu0 %vm772_vm4, %v761_v49  ;;  %v1008_v52 = vld [vmem:[%s3190_s3 + $0x10] sm:$0xff] }
 0x2a8   : > { %783 = vmatpush1.bf16.msra.mxu0 %v774_v51  ;;  %v1007_v51 = vld [vmem:[%s3190_s3 + $0x8] sm:$0xff] }
 0x2a9   : > { %2194 = vmatprep.subr.bf16.mxu0 %v2514_v3 }
 0x2ab   : > { %v754_v54 = vpop.f32.mrb[8].mxu0  ;;  %2027 = vmatmul.mubr.msk.bf16.vlgmr.msra.gmra.mrb[12].mxu0 %vm768_vm5, %v2388_v53 }
 0x2ac   : > { %v762_v55 = vpack.c.bf16 %v754_v54, %v754_v54  ;;  %v2192_v56 = vpop.f32.mrb[9].mxu0  ;;  %2196 = vmatprep.mubr.msk.bf16.mxu0 %vm2513_vm0, %v2514_v3  ;;  %v1009_v54 = vld [vmem:[%s3190_s3 + $0x18] sm:$0xff] }
 0x2ad   : > { %v757_v57 = vpop.f32.mrb[10].mxu0  ;;  %v1010_v56 = vld [vmem:[%s3190_s3 + $0x20] sm:$0xff] }
 0x2ae   : > { %v780_v58 = vsel %vm772_vm4, %v762_v55, 0  ;;  %v2193_v59 = vpop.f32.mrb[11].mxu0  ;;  %v2314_v55 = vpack.c.bf16 %v1009_v54, %v1008_v52  ;;  %v1011_v57 = vld [vmem:[%s3190_s3 + $0x28] sm:$0xff]  ;;  %v2416_v54 = vld [vmem:[%s3193_s6 + $0xc4] ss:$12 sps:$4 sm:$0xff]  }
 0x2af   : > { %2195 = vmatpush3.bf16.msra.mxu0 %v780_v58  ;;  %v2317_v58 = vpack.c.bf16 %v1011_v57, %v1010_v56  ;;  %v2412_v52 = vld [vmem:[%s3193_s6 + $0xac] ss:$12 sps:$4 sm:$0xff]  }
 0x2b0   : > { %2310 = vmatprep.subr.bf16.mxu0 %v2512_v2 }
 0x2b3   : > { %2197 = vmatmul.mubr.msk.bf16.vlgmr.msra.gmra.mrb[16].mxu0 %vm768_vm5, %v2388_v53  ;;  %v2311_v53 = vpack.c.bf16 %v1007_v51, %v1006_v50  ;;  %v2405_v50 = vld [vmem:[%s3192_s5] sm:$0xff]   ;;  %v2406_v51 = vld [vmem:[%s3193_s6 + $0x90] ss:$12 sps:$4 sm:$0xff]  }
 0x2b4   : > { %2239 = vmatprep.mubr.msk.f32.mxu0 %vm2513_vm0, %v2514_v3 }
 0x2b5   : > { %2312 = vmatpush3.bf16.msra.mxu0 %v2311_v53  ;;  %v2410_v53 = vld [vmem:[%s3193_s6 + $0xa8] ss:$12 sps:$4 sm:$0xff]  }
 0x2b6   : > { %2313 = vmatprep.subr.bf16.mxu0 %v2512_v2 }
 0x2b9   : > { %2315 = vmatpush3.bf16.msra.mxu0 %v2314_v55  ;;  %v2414_v55 = vld [vmem:[%s3193_s6 + $0xc0] ss:$12 sps:$4 sm:$0xff]  }
 0x2ba   : > { %2316 = vmatprep.subr.bf16.mxu0 %v2512_v2 }
 0x2bd   : > { %2318 = vmatpush3.bf16.msra.mxu0 %v2317_v58 }
 0x2be   : > { %2319 = vmatprep.subr.bf16.mxu0 %v2512_v2 }
 0x2c1   : > { %2321 = vmatpush3.bf16.msra.mxu0 %v2320_v62 }
 0x2c2   : > { %2322 = vmatprep.subr.bf16.mxu0 %v2512_v2 }
 0x2c5   : > { %2324 = vmatpush3.bf16.msra.mxu0 %v2323_v4  ;;  %v2418_v4 = vld [vmem:[%s3193_s6 + $0xd8] ss:$12 sps:$4 sm:$0xff]  }
 0x2c6   : > { %2325 = vmatprep.subr.bf16.mxu0 %v2512_v2 }
 0x37e   : > { %v816_v12 = vpop.f32.mrb[12].mxu0 }
 0x37f   : > { %v818_v13 = vpop.f32.mrb[13].mxu0  ;;  %v868_v15 = vrot.slane %v816_v12, 7  ;;  %v1017_v12 = vld [vmem:[%s3190_s3 + $0x58] sm:$0xff] }
 0x380   : > { %v820_v14 = vpop.f32.mrb[14].mxu0 }
 0x381   : > { %v869_v16 = vrot.slane %v820_v14, 7  ;;  %v822_v17 = vpop.f32.mrb[15].mxu0  ;;  %v1018_v14 = vld [vmem:[%s3190_s3 + $0x60] sm:$0xff] }
 0x383   : > { %v872_v18 = vsel %vm870_vm6, %v869_v16, %v868_v15  ;;  %v871_v19 = vsel %vm870_vm6, %v868_v15, %v869_v16  ;;  %v1019_v15 = vld [vmem:[%s3190_s3 + $0x68] sm:$0xff] }
 0x384   : > { %v873_v20 = vsel %vm866_vm7, 0.0, %v872_v18  ;;  %v885_v21 = vadd.f32 %v871_v19, %v822_v17  ;;  %v2329_v16 = vpack.c.bf16 %v1019_v15, %v1018_v14  ;;  %v1020_v17 = vld [vmem:[%s3190_s3 + $0x70] sm:$0xff]  ;;  %v1021_v18 = vld [vmem:[%s3190_s3 + $0x78] sm:$0xff] }
 0x385   : > { %v884_v22 = vadd.f32 %v873_v20, %v818_v13  ;;  %v2326_v13 = vpack.c.bf16 %v1017_v12, %v1016_v5  ;;  %v2332_v19 = vpack.c.bf16 %v1021_v18, %v1020_v17  ;;  %v2389_v20 = vld [vmem:[%s3193_s6 + $0x30] ss:$12 sps:$4 sm:$0xff]   ;;  %v2421_v12 = vld [vmem:[%s3193_s6 + $0xe0] ss:$12 sps:$4 sm:$0xff]   ;;  %v2425_v15 = vld [vmem:[%s3193_s6 + $0xf8] ss:$12 sps:$4 sm:$0xff]  }
 0x386   : > { %v859_v24 = vpop.f32.mrb[16].mxu0  ;;  %v2420_v5 = vld [vmem:[%s3193_s6 + $0xdc] ss:$12 sps:$4 sm:$0xff]  }
 0x387   : > { %v2198_v25 = vpop.f32.mrb[17].mxu0  ;;  %v877_v27 = vrot.slane %v859_v24, 1  ;;  %2327 = vmatpush3.bf16.msra.mxu0 %v2326_v13  ;;  %v2392_v24 = vld [vmem:[%s3193_s6 + $0x48] ss:$12 sps:$4 sm:$0xff]   ;;  %v2422_v14 = vld [vmem:[%s3193_s6 + $0xf0] ss:$12 sps:$4 sm:$0xff]  }
 0x388   : > { %v862_v26 = vpop.f32.mrb[18].mxu0  ;;  %2328 = vmatprep.subr.bf16.mxu0 %v2512_v2  ;;  %v2395_v25 = vld [vmem:[%s3193_s6 + $0x60] ss:$12 sps:$4 sm:$0xff]   ;;  %v2426_v17 = vld [vmem:[%s3193_s6 + $0x108] ss:$12 sps:$4 sm:$0xff]  }
 0x389   : > { %v878_v28 = vrot.slane %v862_v26, 1  ;;  %v2199_v29 = vpop.f32.mrb[19].mxu0  ;;  %v2424_v13 = vld [vmem:[%s3193_s6 + $0xf4] ss:$12 sps:$4 sm:$0xff]   ;;  %v2429_v18 = vld [vmem:[%s3193_s6 + $0x110] ss:$12 sps:$4 sm:$0xff]  }
 0x38a   : > { %v2398_v29 = vld [vmem:[%s3193_s6 + $0x78] ss:$12 sps:$4 sm:$0xff]  }
 0x38b   : > { %v880_v30 = vsel %vm879_vm8, %v877_v27, %v878_v28  ;;  %v881_v31 = vsel %vm879_vm8, %v878_v28, %v877_v27  ;;  %2330 = vmatpush3.bf16.msra.mxu0 %v2329_v16  ;;  %v2400_v28 = vld [vmem:[%s3193_s6 + $0x7c] ss:$12 sps:$4 sm:$0xff]   ;;  %v2428_v16 = vld [vmem:[%s3193_s6 + $0x10c] ss:$12 sps:$4 sm:$0xff]  }
 0x38c   : > { %v883_v33 = vsel %vm876_vm9, 0.0, %v881_v31  ;;  %v886_v34 = vadd.f32 %v884_v22, %v880_v30  ;;  %2331 = vmatprep.subr.bf16.mxu0 %v2512_v2  ;;  %v2394_v22 = vld [vmem:[%s3193_s6 + $0x4c] ss:$12 sps:$4 sm:$0xff]   ;;  %v2397_v2 = vld [vmem:[%s3193_s6 + $0x64] ss:$12 sps:$4 sm:$0xff]  }
 0x38d   : > { %v887_v35 = vadd.f32 %v885_v21, %v883_v33  ;;  %v2391_v21 = vld [vmem:[%s3193_s6 + $0x34] ss:$12 sps:$4 sm:$0xff]   ;;  %v2401_v33 = vld [vmem:[%s3193_s6 + $0x38] ss:$12 sps:$4 sm:$0xff]  }
 0x38e   : > { %v2759_v36 = vadd.f32 %v2029_v32, %v886_v34 }
 0x38f   : > { %v2761_v37 = vadd.f32 %v2029_v32, %v887_v35  ;;  %2333 = vmatpush3.bf16.msra.mxu0 %v2332_v19  ;;  %v2402_v35 = vld [vmem:[%s3193_s6 + $0x50] ss:$12 sps:$4 sm:$0xff]  }
 0x390   : > { %v2765_v39 = vsub.f32 %v2630_v9, %v2759_v36  ;;  %v2432_v19 = vld [vmem:[%s3193_s6 + $0x124] ss:$12 sps:$4 sm:$0xff]  }
 0x391   : > { %v2769_v40 = vsub.f32 %v2633_v10, %v2761_v37 }
 0x392   : > { %v2030_v42 = vmul.f32 4.0, %v2765_v39 }
 0x393   : > { %v2031_v43 = vmul.f32 4.0, %v2769_v40  ;;  %v2308_v44 = vpack.c.bf16 %v2769_v40, %v2765_v39 }
 0x394   : > { %v925_v45 = vmul.f32 1.442695, %v2030_v42  ;;  %v2403_v42 = vld [vmem:[%s3193_s6 + $0x68] ss:$12 sps:$4 sm:$0xff]  }
 0x395   : > { %v927_v46 = vmul.f32 1.442695, %v2031_v43  ;;  %2309 = vmatpush3.bf16.msra.mxu1 %v2308_v44  ;;  %v2404_v43 = vld [vmem:[%s3193_s6 + $0x80] ss:$12 sps:$4 sm:$0xff]  }
 0x396   : > { %2446 = vpow2.f32 %v925_v45  ;;  %1254 = vmatprep.subr.bf16.mxu1 %v2391_v21  ;;  %v2433_v21 = vld [vmem:[%s3193_s6 + $0x128] ss:$12 sps:$4 sm:$0xff]  }
 0x397   : > { %2448 = vpow2.f32 %v927_v46 }
 0x398   : > { %2205 = vmatmul.mubr.msk.f32.vlgmr.msra.gmra.mrb[2].mxu1 %vm488_vm1, %v1005_v47 }
 0x399   : > { %1286 = vmatprep.mubr.bf16.mxu1 %v2515_v38  ;;  %1255 = vmatpush1.bf16.msra.mxu1 %v2389_v20  ;;  %v2430_v20 = vld [vmem:[%s3193_s6 + $0x120] ss:$12 sps:$4 sm:$0xff]  }
 0x39a   : > { %1256 = vmatprep.subr.bf16.mxu1 %v2394_v22  ;;  %v2436_v22 = vld [vmem:[%s3193_s6 + $0x13c] ss:$12 sps:$4 sm:$0xff]  }
 0x39d   : > { %1257 = vmatpush1.bf16.msra.mxu1 %v2392_v24  ;;  %v2434_v24 = vld [vmem:[%s3193_s6 + $0x138] ss:$12 sps:$4 sm:$0xff]  }
 0x39e   : > { %1258 = vmatprep.subr.bf16.mxu1 %v2397_v2  ;;  %v2437_v2 = vld [vmem:[%s3193_s6 + $0x140] ss:$12 sps:$4 sm:$0xff]  }
 0x3a0   : > { %v2447_v9 = vpop.eup %2446 }
 0x3a1   : > { %v2449_v10 = vpop.eup %2448  ;;  %v929_v48 = vadd.f32 1.0, %v2447_v9  ;;  %1259 = vmatpush1.bf16.msra.mxu1 %v2395_v25 }
 0x3a2   : > { %v930_v49 = vadd.f32 1.0, %v2449_v10  ;;  %1260 = vmatprep.subr.bf16.mxu1 %v2400_v28  ;;  %v2408_v10 = vld [vmem:[%s3193_s6 + $0x94] ss:$12 sps:$4 sm:$0xff]  }
 0x3a3   : > { %2450 = vrcp.f32 %v929_v48 }
 0x3a4   : > { %2452 = vrcp.f32 %v930_v49 }
 0x3a5   : > { %1261 = vmatpush1.bf16.msra.mxu1 %v2398_v29 }
 0x3a6   : > { %2242 = vmatprep.subr.bf16.mxu1 %v2514_v3 }
 0x3ad   : > { %v2799_v59 = vpop.eup %2450 }
 0x3ae   : > { %967 = vrot.lane.b32.xlu1 %v2799_v59, %s2517_s15  ;;  %v2810_v63 = vpop.eup %2452 }
 0x3b2   : > { %969 = vrot.lane.b32.xlu1 %v2810_v63, %s2517_s15 }
 0x46b   : > { %v1093_v26 = vpop.f32.mrb[2].mxu1 }
 0x46c   : > { %v2206_v27 = vpop.f32.mrb[3].mxu1  ;;  %2240 = vmatmul.mubr.f32.vlgmr.msra.gmra.mrb[2].mxu0 %v1093_v26 }
 0x46d   : > { %1389 = vmatprep.mubr.bf16.mxu0 %v2515_v38 }
 0x53f   : > { %v1163_v30 = vpop.f32.mrb[2].mxu0 }
 0x540   : > { %vm1167_vm10 = vcmp.gt.f32.partialorder %v1163_v30, 0.0  ;;  %v2241_v31 = vpop.f32.mrb[3].mxu0 }
 0x541   : > { %v1168_v32 = vsel %vm1167_vm10, 1.0, %v2516_v41 }
 0x542   : > { %v1169_v34 = vpack.c.bf16 %v1168_v32, %v1168_v32 }
 0x544   : > { %2045 = vmatmul.mubr.msk.bf16.vlgmr.msra.gmra.mrb[4].mxu1 %vm1250_vm11, %v1169_v34 }
 0x545   : > { %2243 = vmatpush3.bf16.msra.mxu1 %v2401_v33  ;;  %2250 = vmatprep.mubr.msk.bf16.mxu1 %vm2513_vm0, %v2514_v3 }
 0x546   : > { %2244 = vmatprep.subr.bf16.mxu1 %v2514_v3 }
 0x549   : > { %2245 = vmatpush3.bf16.msra.mxu1 %v2402_v35 }
 0x54a   : > { %2246 = vmatprep.subr.bf16.mxu1 %v2514_v3 }
 0x54d   : > { %2247 = vmatpush3.bf16.msra.mxu1 %v2403_v42 }
 0x54e   : > { %2248 = vmatprep.subr.bf16.mxu1 %v2514_v3 }
 0x551   : > { %2249 = vmatpush3.bf16.msra.mxu1 %v2404_v43 }
 0x552   : > { %2254 = vmatprep.subr.bf16.mxu1 %v2514_v3 }
 0x554   : > { %2251 = vmatmul.mubr.msk.bf16.vlgmr.msra.gmra.mrb[8].mxu1 %vm1250_vm11, %v1169_v34 }
 0x555   : > { %2256 = vmatprep.mubr.msk.bf16.mxu1 %vm2513_vm0, %v2514_v3 }
 0x617   : > { %v1288_v44 = vpop.f32.mrb[4].mxu1 }
 0x618   : > { %v1335_v45 = vpack.c.bf16 %v1288_v44, %v1288_v44  ;;  %v1290_v46 = vpop.f32.mrb[5].mxu1 }
 0x619   : > { %v1336_v47 = vpack.c.bf16 %v1290_v46, %v1290_v46  ;;  %v1292_v9 = vpop.f32.mrb[6].mxu1 }
 0x61a   : > { %v1349_v48 = vsel %vm1347_vm12, %v1335_v45, 0  ;;  %v1293_v49 = vpop.f32.mrb[7].mxu1 }
 0x61b   : > { %2048 = vmatprep.subr.msk.bf16.mxu0 %vm1347_vm12, %v1336_v47 }
 0x61c   : > { %1358 = vmatpush1.bf16.msra.mxu0 %v1349_v48 }
 0x61d   : > { %1737 = vmatprep.subr.bf16.mxu0 %v2408_v10  ;;  %v2051_v10 = vld [vmem:[%s3194_s7 + $0x1] ss:$0 sm:$0xff] }
 0x61f   : > { %2049 = vmatmul.mubr.msk.bf16.vlgmr.msra.gmra.mrb[20].mxu0 %vm1343_vm13, %v2405_v50 }
 0x620   : > { %1738 = vmatpush1.bf16.msra.mxu0 %v2406_v51  ;;  %1769 = vmatprep.mubr.bf16.mxu0 %v2515_v38  ;;  %v2409_v38 = vld [vmem:[%s3193_s6 + $0x98] ss:$12 sps:$4 sm:$0xff]  }
 0x621   : > { %1739 = vmatprep.subr.bf16.mxu0 %v2412_v52 }
 0x624   : > { %1740 = vmatpush1.bf16.msra.mxu0 %v2410_v53 }
 0x625   : > { %1741 = vmatprep.subr.bf16.mxu0 %v2416_v54 }
 0x627   : > { %v1329_v56 = vpop.f32.mrb[8].mxu1 }
 0x628   : > { %v1337_v57 = vpack.c.bf16 %v1329_v56, %v1329_v56  ;;  %v2252_v58 = vpop.f32.mrb[9].mxu1  ;;  %1742 = vmatpush1.bf16.msra.mxu0 %v2414_v55 }
 0x629   : > { %v1332_v60 = vpop.f32.mrb[10].mxu1  ;;  %1743 = vmatprep.subr.bf16.mxu0 %v2420_v5 }
 0x62a   : > { %v1355_v61 = vsel %vm1347_vm12, %v1337_v57, 0  ;;  %v2253_v62 = vpop.f32.mrb[11].mxu1 }
 0x62b   : > { %2255 = vmatpush3.bf16.msra.mxu1 %v1355_v61 }
 0x62c   : > { %2260 = vmatprep.subr.bf16.mxu1 %v2514_v3  ;;  %1744 = vmatpush1.bf16.msra.mxu0 %v2418_v4  ;;  %v968_v4 = vpop.permute.xlu1 %967 }
 0x62d   : > { %1745 = vmatprep.subr.bf16.mxu0 %v2424_v13 }
 0x62e   : > { %2257 = vmatmul.mubr.msk.bf16.vlgmr.msra.gmra.mrb[12].mxu1 %vm1343_vm13, %v2405_v50 }
 0x62f   : > { %2261 = vmatpush3.bf16.msra.mxu1 %v2409_v38  ;;  %2276 = vmatprep.mubr.msk.bf16.mxu1 %vm2513_vm0, %v2514_v3 }
 0x630   : > { %2262 = vmatprep.subr.bf16.mxu1 %v2514_v3  ;;  %1746 = vmatpush1.bf16.msra.mxu0 %v2422_v14 }
 0x631   : > { %1747 = vmatprep.subr.bf16.mxu0 %v2428_v16  ;;  %v971_v16 = vadd.f32 %v2799_v59, %v968_v4 }
 0x633   : > { %2263 = vmatpush3.bf16.msra.mxu1 %v2413_v0 }
 0x634   : > { %2264 = vmatprep.subr.bf16.mxu1 %v2514_v3  ;;  %1748 = vmatpush1.bf16.msra.mxu0 %v2426_v17 }
 0x635   : > { %1749 = vmatprep.subr.bf16.mxu0 %v2432_v19 }
 0x637   : > { %2265 = vmatpush3.bf16.msra.mxu1 %v2417_v1 }
 0x638   : > { %2266 = vmatprep.subr.bf16.mxu1 %v2514_v3  ;;  %1750 = vmatpush1.bf16.msra.mxu0 %v2430_v20 }
 0x639   : > { %1751 = vmatprep.subr.bf16.mxu0 %v2436_v22 }
 0x63b   : > { %2267 = vmatpush3.bf16.msra.mxu1 %v2421_v12 }
 0x63c   : > { %2268 = vmatprep.subr.bf16.mxu1 %v2514_v3  ;;  %1752 = vmatpush1.bf16.msra.mxu0 %v2434_v24 }
 0x63f   : > { %2269 = vmatpush3.bf16.msra.mxu1 %v2425_v15  ;;  %v970_v15 = vpop.permute.xlu1 %969 }
 0x640   : > { %2270 = vmatprep.subr.bf16.mxu1 %v2514_v3  ;;  %v972_v17 = vadd.f32 %v2810_v63, %v970_v15 }
 0x643   : > { %2271 = vmatpush3.bf16.msra.mxu1 %v2429_v18 }
 0x644   : > { %2272 = vmatprep.subr.bf16.mxu1 %v2514_v3 }
 0x647   : > { %2273 = vmatpush3.bf16.msra.mxu1 %v2433_v21  ;;  %v406_v21 = vsub.f32 1.0, %v2726_v6 }
 0x648   : > { %2274 = vmatprep.subr.bf16.mxu1 %v2514_v3 }
 0x64b   : > { %2275 = vmatpush3.bf16.msra.mxu1 %v2437_v2  ;;  %v407_v2 = vsub.f32 1.0, %v2730_v7 }
 0x6f2   : > { %v1391_v25 = vpop.f32.mrb[20].mxu0 }
 0x6f3   : > { %v1441_v26 = vrot.slane %v1391_v25, 7  ;;  %v1393_v27 = vpop.f32.mrb[21].mxu0 }
 0x6f4   : > { %v1395_v28 = vpop.f32.mrb[22].mxu0 }
 0x6f5   : > { %v1442_v29 = vrot.slane %v1395_v28, 7  ;;  %v1397_v30 = vpop.f32.mrb[23].mxu0 }
 0x6f7   : > { %v1444_v3 = vsel %vm870_vm6, %v1442_v29, %v1441_v26  ;;  %v1443_v31 = vsel %vm870_vm6, %v1441_v26, %v1442_v29  ;;  %v398_v26 = vadd.f32 1e-08, %v2726_v6  ;;  %v408_v29 = vadd.f32 1e-08, %v406_v21 }
 0x6f8   : > { %v1445_v32 = vsel %vm866_vm7, 0.0, %v1444_v3  ;;  %v1454_v33 = vadd.f32 %v1443_v31, %v1397_v30  ;;  %v409_v3 = vadd.f32 1e-08, %v407_v2 }
 0x6f9   : > { %v1453_v34 = vadd.f32 %v1445_v32, %v1393_v27  ;;  %v399_v27 = vadd.f32 1e-08, %v2730_v7  ;;  %v943_v32 = vsub.f32 1.0, %v2799_v59 }
 0x701   : > { %v1434_v35 = vpop.f32.mrb[12].mxu1 }
 0x702   : > { %v2258_v42 = vpop.f32.mrb[13].mxu1  ;;  %v1447_v44 = vrot.slane %v1434_v35, 1 }
 0x703   : > { %v1437_v43 = vpop.f32.mrb[14].mxu1 }
 0x704   : > { %v1448_v45 = vrot.slane %v1437_v43, 1  ;;  %v2259_v46 = vpop.f32.mrb[15].mxu1  ;;  %v945_v43 = vadd.f32 1e-08, %v943_v32 }
 0x705   : > { %v936_v46 = vadd.f32 1e-08, %v2810_v63 }
 0x706   : > { %v1449_v47 = vsel %vm879_vm8, %v1447_v44, %v1448_v45  ;;  %v1450_v9 = vsel %vm879_vm8, %v1448_v45, %v1447_v44  ;;  %v935_v45 = vadd.f32 1e-08, %v2799_v59 }
 0x707   : > { %v1452_v48 = vsel %vm876_vm9, 0.0, %v1450_v9  ;;  %v1455_v49 = vadd.f32 %v1453_v34, %v1449_v47  ;;  %v944_v34 = vsub.f32 1.0, %v2810_v63 }
 0x708   : > { %v1456_v50 = vadd.f32 %v1454_v33, %v1452_v48 }
 0x709   : > { %v2998_v51 = vadd.f32 %v2051_v10, %v1455_v49  ;;  %v946_v44 = vadd.f32 1e-08, %v944_v34 }
 0x70a   : > { %v3000_v52 = vadd.f32 %v2051_v10, %v1456_v50 }
 0x70b   : > { %v1466_v53 = vsub.f32 %v2765_v39, %v2998_v51  ;;  %v1464_v11 = vadd.f32 %v2998_v51, %v2759_v36 }
 0x70c   : > { %v1467_v54 = vsub.f32 %v2769_v40, %v3000_v52  ;;  %v431_v40 = vpop.permute.xlu0 %430 }
 0x70d   : > { %v2052_v55 = vmul.f32 4.0, %v1466_v53  ;;  %vm1572_vm14 = vcmp.gt.f32.partialorder %v1466_v53, 0.0 }
 0x70e   : > { %v2053_v56 = vmul.f32 4.0, %v1467_v54  ;;  %vm1573_vm15 = vcmp.gt.f32.partialorder %v1467_v54, 0.0  ;;  %v1574_v57 = vsel %vm1572_vm14, 1.0, %v2516_v41 }
 0x70f   : > { %v1492_v58 = vmul.f32 1.442695, %v2052_v55  ;;  %v1575_v60 = vsel %vm1573_vm15, 1.0, %v2516_v41  ;;  %v434_v41 = vadd.f32 %v2726_v6, %v431_v40 }
 0x710   : > { %v1494_v61 = vmul.f32 1.442695, %v2053_v56  ;;  %v1576_v62 = vpack.c.bf16 %v1575_v60, %v1574_v57  ;;  %v433_v5 = vpop.permute.xlu0 %432 }
 0x711   : > { %2454 = vpow2.f32 %v1492_v58  ;;  %v435_v14 = vadd.f32 %v2730_v7, %v433_v5 }
 0x712   : > { %2456 = vpow2.f32 %v1494_v61  ;;  %1770 = vmatmul.mubr.bf16.vlgmr.msra.gmra.mrb[24].mxu0 %v1576_v62  ;;  %2277 = vmatmul.mubr.bf16.vlgmr.msra.gmra.mrb[16].mxu1 %v1576_v62 }
 0x71b   : > { %v2455_v38 = vpop.eup %2454 }
 0x71c   : > { %v2457_v39 = vpop.eup %2456  ;;  %v1496_v0 = vadd.f32 1.0, %v2455_v38 }
 0x71d   : > { %v1497_v1 = vadd.f32 1.0, %v2457_v39 }
 0x71e   : > { %2458 = vrcp.f32 %v1496_v0 }
 0x71f   : > { %2460 = vrcp.f32 %v1497_v1 }
 0x720   : > { %2462 = vlog2.f32 %v398_v26 }
 0x721   : > { %2464 = vlog2.f32 %v399_v27 }
 0x722   : > { %2466 = vlog2.f32 %v408_v29 }
 0x723   : > { %2468 = vlog2.f32 %v409_v3 }
 0x724   : > { %2470 = vlog2.f32 %v945_v43 }
 0x725   : > { %2472 = vlog2.f32 %v946_v44 }
 0x726   : > { %2474 = vlog2.f32 %v935_v45 }
 0x727   : > { %2476 = vlog2.f32 %v936_v46 }
 0x728   : > { %v3008_v12 = vpop.eup %2458 }
 0x729   : > { %v3010_v13 = vpop.eup %2460  ;;  %1534 = vrot.lane.b32.xlu0 %v3008_v12, %s2517_s15 }
 0x72a   : > { %1536 = vrot.lane.b32.xlu1 %v3010_v13, %s2517_s15  ;;  %s2519_s15 = smov 16   ;;  %v2463_v47 = vpop.eup %2462 }
 0x72b   : > { %v2465_v9 = vpop.eup %2464  ;;  %v401_v49 = vmul.f32 0.6931472, %v2463_v47 }
 0x72c   : > { %v2467_v10 = vpop.eup %2466  ;;  %v403_v50 = vmul.f32 0.6931472, %v2465_v9 }
 0x72d   : > { %436 = vrot.lane.b32.xlu0 %v434_v41, %s2518_s28  ;;  %v2469_v48 = vpop.eup %2468  ;;  %v411_v53 = vmul.f32 0.6931472, %v2467_v10  ;;  %v404_v58 = vmul.f32 %v2726_v6, %v401_v49 }
 0x72e   : > { %438 = vrot.lane.b32.xlu1 %v435_v14, %s2518_s28  ;;  %v413_v54 = vmul.f32 0.6931472, %v2469_v48  ;;  %v2471_v55 = vpop.eup %2470  ;;  %v405_v60 = vmul.f32 %v2730_v7, %v403_v50 }
 0x72f   : > { %v2473_v56 = vpop.eup %2472  ;;  %v414_v61 = vmul.f32 %v411_v53, %v406_v21  ;;  %v948_v39 = vmul.f32 0.6931472, %v2471_v55 }
 0x730   : > { %v2475_v57 = vpop.eup %2474  ;;  %v415_v62 = vmul.f32 %v413_v54, %v407_v2  ;;  %v950_v0 = vmul.f32 0.6931472, %v2473_v56 }
 0x731   : > { %973 = vrot.lane.b32.xlu0 %v971_v16, %s2518_s28  ;;  %v2477_v38 = vpop.eup %2476  ;;  %v416_v1 = vadd.f32 %v414_v61, %v404_v58  ;;  %v938_v4 = vmul.f32 0.6931472, %v2475_v57 }
 0x732   : > { %975 = vrot.lane.b32.xlu1 %v972_v17, %s2518_s28  ;;  %v417_v40 = vadd.f32 %v415_v62, %v405_v60  ;;  %v940_v5 = vmul.f32 0.6931472, %v2477_v38  ;;  %v2078_v60 = vld [vmem:[%s3194_s7 + $0x2] ss:$0 sm:$0xff] }
 0x733   : > { %v418_v15 = vsub.f32 0.0, %v416_v1 }
 0x734   : > { %v942_v6 = vmul.f32 %v2810_v63, %v940_v5 }
 0x79b   : > { %v1535_v18 = vpop.permute.xlu0 %1534 }
 0x79c   : > { %v1537_v19 = vpop.permute.xlu1 %1536  ;;  %v3048_v35 = vadd.f32 %v3008_v12, %v1535_v18 }
 0x79d   : > { %v3039_v31 = vadd.f32 %v3010_v13, %v1537_v19 }
 0x79f   : > { %v437_v20 = vpop.permute.xlu0 %436 }
 0x7a0   : > { %v3025_v22 = vadd.f32 %v437_v20, %v434_v41  ;;  %v439_v24 = vpop.permute.xlu1 %438  ;;  %v951_v41 = vmul.f32 %v948_v39, %v943_v32  ;;  %v3063_v20 = vld [vmem:[%s2627_s19] sm:$0xff]  ;;  %v1465_v39 = vadd.f32 %v3000_v52, %v2761_v37 }
 0x7a1   : > { %v3028_v25 = vadd.f32 %v439_v24, %v435_v14  ;;  %v952_v14 = vmul.f32 %v950_v0, %v944_v34  ;;  %v899_v21 = vsub.f32 %v2759_v36, %v3063_v20  ;;  %v3068_v24 = vld [vmem:[%s2627_s19 + $0x8] sm:$0xff]  ;;  %s2080_s19 = sshll.u32 (%p2597_p5), %s2585_s12, 3 }
 0x7a2   : > { %442 = vrot.lane.b32.xlu0 %v3025_v22, %s2519_s15  ;;  %v900_v2 = vsub.f32 %v2761_v37, %v3068_v24 }
 0x7a3   : > { %444 = vrot.lane.b32.xlu1 %v3028_v25, %s2519_s15  ;;  %v974_v28 = vpop.permute.xlu0 %973  ;;  %v954_v18 = vadd.f32 %v952_v14, %v942_v6 }
 0x7a4   : > { %v3036_v30 = vadd.f32 %v974_v28, %v971_v16  ;;  %v976_v33 = vpop.permute.xlu1 %975  ;;  %v419_v16 = vsub.f32 0.0, %v417_v40  ;;  %v901_v28 = vmul.f32 %v899_v21, %v899_v21 }
 0x7a5   : > { %v3050_v42 = vadd.f32 %v976_v33, %v972_v17  ;;  %v941_v17 = vmul.f32 %v2799_v59, %v938_v4  ;;  %v956_v27 = vsub.f32 0.0, %v954_v18  ;;  %v902_v59 = vmul.f32 %v900_v2, %v900_v2 }
 0x7a6   : > { %979 = vrot.lane.b32.xlu0 %v3036_v30, %s2519_s15  ;;  %v420_v19 = vadd.f32 %v419_v16, %v418_v15  ;;  %v1468_v18 = vsub.f32 %v1464_v11, %v3063_v20  ;;  %v1510_v2 = vsub.f32 1.0, %v3008_v12 }
 0x7a7   : > { %1542 = vrot.lane.b32.xlu1 %v3039_v31, %s2518_s28  ;;  %v953_v7 = vadd.f32 %v951_v41, %v941_v17  ;;  %v903_v63 = vadd.f32 %v902_v59, %v901_v28 }
 0x7a9   : > { %v955_v26 = vsub.f32 0.0, %v953_v7 }
 0x7aa   : > { %1540 = vrot.lane.b32.xlu0 %v3048_v35, %s2518_s28 }
 0x7ab   : > { %981 = vrot.lane.b32.xlu1 %v3050_v42, %s2519_s15  ;;  %v957_v29 = vadd.f32 %v956_v27, %v955_v26  ;;  %v1511_v26 = vsub.f32 1.0, %v3010_v13  ;;  %v1512_v27 = vadd.f32 1e-08, %v1510_v2 }
 0x7ad   : > { %v1513_v28 = vadd.f32 1e-08, %v1511_v26  ;;  %2478 = vlog2.f32 %v1512_v27 }
 0x7af   : > { %2480 = vlog2.f32 %v1513_v28 }
 0x7c9   : > { %421 = vadd.xlane.f32.xlu0 %v420_v19  ;;  %v1470_v19 = vmul.f32 %v1468_v18, %v1468_v18 }
 0x7cd   : > { %958 = vadd.xlane.f32.xlu0 %v957_v29 }
 0x7cf   : > { %904 = vadd.xlane.f32.xlu1 %v903_v63 }
 0x7e5   : > { %v1771_v3 = vpop.f32.mrb[24].mxu0  ;;  %v1814_v32 = vpop.f32.mrb[16].mxu1 }
 0x7e6   : > { %v1773_v33 = vpop.f32.mrb[25].mxu0  ;;  %v2278_v34 = vpop.f32.mrb[17].mxu1  ;;  %v1821_v45 = vrot.slane %v1771_v3, 7  ;;  %v1827_v46 = vrot.slane %v1814_v32, 1 }
 0x7e7   : > { %v1775_v43 = vpop.f32.mrb[26].mxu0  ;;  %v1817_v44 = vpop.f32.mrb[18].mxu1 }
 0x7e8   : > { %v1822_v47 = vrot.slane %v1775_v43, 7  ;;  %v1828_v9 = vrot.slane %v1817_v44, 1  ;;  %v1777_v10 = vpop.f32.mrb[27].mxu0  ;;  %v2279_v48 = vpop.f32.mrb[19].mxu1 }
 0x7e9   : > { %v2479_v43 = vpop.eup %2478 }
 0x7ea   : > { %v1824_v49 = vsel %vm870_vm6, %v1822_v47, %v1821_v45  ;;  %v1829_v50 = vsel %vm879_vm8, %v1827_v46, %v1828_v9  ;;  %v1823_v53 = vsel %vm870_vm6, %v1821_v45, %v1822_v47  ;;  %v1830_v54 = vsel %vm879_vm8, %v1828_v9, %v1827_v46  ;;  %v2481_v46 = vpop.eup %2480 }
 0x7eb   : > { %v1825_v55 = vsel %vm866_vm7, 0.0, %v1824_v49  ;;  %v1832_v56 = vsel %vm876_vm9, 0.0, %v1830_v54  ;;  %v1834_v57 = vadd.f32 %v1823_v53, %v1777_v10 }
 0x7ec   : > { %v1833_v58 = vadd.f32 %v1825_v55, %v1773_v33 }
 0x7ed   : > { %v1836_v61 = vadd.f32 %v1834_v57, %v1832_v56  ;;  %v1517_v56 = vmul.f32 0.6931472, %v2481_v46 }
 0x7ee   : > { %v1835_v62 = vadd.f32 %v1833_v58, %v1829_v50  ;;  %v1515_v50 = vmul.f32 0.6931472, %v2479_v43 }
 0x7ef   : > { %v1843_v38 = vadd.f32 %v2078_v60, %v1836_v61 }
 0x7f0   : > { %v1842_v0 = vadd.f32 %v2078_v60, %v1835_v62 }
 0x7f1   : > { %v1845_v1 = vadd.f32 %v1843_v38, %v1465_v39  ;;  %v1518_v38 = vmul.f32 %v1515_v50, %v1510_v2 }
 0x7f2   : > { %v1844_v40 = vadd.f32 %v1842_v0, %v1464_v11 }
 0x7f3   : > { %v1847_v23 = vsub.f32 %v1845_v1, %v3068_v24  ;;  %1867 = vst [vmem:[%s3093_s11 + $0x8] sm:$0xff] %v1845_v1 }
 0x7f4   : > { %v1846_v4 = vsub.f32 %v1844_v40, %v3063_v20  ;;  %1866 = vst [vmem:[%s3093_s11] sm:$0xff] %v1844_v40  ;;  %v1503_v20 = vadd.f32 1e-08, %v3010_v13 }
 0x7f5   : > { %v1849_v5 = vmul.f32 %v1847_v23, %v1847_v23 }
 0x7f6   : > { %v1848_v41 = vmul.f32 %v1846_v4, %v1846_v4 }
 0x7f8   : > { %v1850_v14 = vadd.f32 %v1849_v5, %v1848_v41 }
 0x814   : > { %v443_v37 = vpop.permute.xlu0 %442 }
 0x815   : > { %v3099_v52 = vadd.f32 %v443_v37, %v3025_v22  ;;  %v445_v36 = vpop.permute.xlu1 %444 }
 0x816   : > { %v3129_v59 = vadd.f32 %v445_v36, %v3028_v25 }
 0x817   : > { %448 = vrot.lane.b32.xlu1 %v3099_v52, %s2520_s30 }
 0x818   : > { %v980_v51 = vpop.permute.xlu0 %979 }
 0x819   : > { %v1543_v15 = vpop.permute.xlu1 %1542  ;;  %v3112_v22 = vadd.f32 %v980_v51, %v3036_v30 }
 0x81a   : > { %v3104_v16 = vadd.f32 %v1543_v15, %v3039_v31 }
 0x81c   : > { %1548 = vrot.lane.b32.xlu1 %v3104_v16, %s2519_s15  ;;  %v1541_v17 = vpop.permute.xlu0 %1540 }
 0x81d   : > { %v3109_v6 = vadd.f32 %v1541_v17, %v3048_v35  ;;  %v982_v7 = vpop.permute.xlu1 %981  ;;  %v1469_v35 = vsub.f32 %v1465_v39, %v3068_v24  ;;  %v1519_v39 = vmul.f32 %v1517_v56, %v1511_v26 }
 0x81e   : > { %v3119_v31 = vadd.f32 %v982_v7, %v3050_v42  ;;  %v1502_v42 = vadd.f32 1e-08, %v3008_v12 }
 0x81f   : > { %1546 = vrot.lane.b32.xlu0 %v3109_v6, %s2519_s15  ;;  %v1471_v30 = vmul.f32 %v1469_v35, %v1469_v35  ;;  %s375_s15 = scalar_lea.vmem %s3196_s9, %s2013_s25 }
 0x820   : > { %985 = vrot.lane.b32.xlu1 %v3112_v22, %s2520_s30  ;;  %2482 = vlog2.f32 %v1502_v42 }
 0x821   : > { %v1472_v21 = vadd.f32 %v1471_v30, %v1470_v19  ;;  %2484 = vlog2.f32 %v1503_v20 }
 0x824   : > { %987 = vrot.lane.b32.xlu1 %v3119_v31, %s2520_s30 }
 0x82a   : > { %v2483_v47 = vpop.eup %2482 }
 0x82b   : > { %v2485_v49 = vpop.eup %2484  ;;  %v1505_v58 = vmul.f32 0.6931472, %v2483_v47 }
 0x82c   : > { %v1507_v60 = vmul.f32 0.6931472, %v2485_v49 }
 0x82d   : > { %v1508_v11 = vmul.f32 %v3008_v12, %v1505_v58 }
 0x82e   : > { %v1509_v1 = vmul.f32 %v3010_v13, %v1507_v60 }
 0x82f   : > { %v1520_v23 = vadd.f32 %v1518_v38, %v1508_v11 }
 0x830   : > { %v1521_v4 = vadd.f32 %v1519_v39, %v1509_v1 }
 0x831   : > { %v1522_v5 = vsub.f32 0.0, %v1520_v23 }
 0x832   : > { %v1523_v41 = vsub.f32 0.0, %v1521_v4 }
 0x83e   : > { %1473 = vadd.xlane.f32.xlu0 %v1472_v21 }
 0x848   : > { %1851 = vadd.xlane.f32.xlu1 %v1850_v14  ;;  %v1524_v14 = vadd.f32 %v1523_v41, %v1522_v5 }
 0x854   : > { %450 = vrot.lane.b32.xlu0 %v3129_v59, %s2520_s30 }
 0x856   : > { %v422_v24 = vpop.xlane.xlu0 %421 }
 0x857   : > { %v423_v29 = vrot.slane %v422_v24, 4 }
 0x859   : > { %v424_v63 = vadd.f32 %v423_v29, %v422_v24 }
 0x85a   : > { %v959_v3 = vpop.xlane.xlu0 %958 }
 0x85b   : > { %v425_v32 = vrot.slane %v424_v63, 2  ;;  %v960_v33 = vrot.slane %v959_v3, 4 }
 0x85c   : > { %v905_v34 = vpop.xlane.xlu1 %904 }
 0x85d   : > { %v961_v44 = vadd.f32 %v960_v33, %v959_v3  ;;  %v906_v25 = vrot.slane %v905_v34, 4  ;;  %v426_v45 = vadd.f32 %v425_v32, %v424_v63 }
 0x85f   : > { %v962_v9 = vrot.slane %v961_v44, 2  ;;  %v907_v10 = vadd.f32 %v906_v25, %v905_v34  ;;  %v427_v48 = vrot.slane %v426_v45, 1 }
 0x861   : > { %v908_v53 = vrot.slane %v907_v10, 2  ;;  %v428_v54 = vadd.f32 %v427_v48, %v426_v45  ;;  %v963_v55 = vadd.f32 %v962_v9, %v961_v44 }
 0x863   : > { %2334 = vpush %v428_v54  ;;  %v909_v57 = vadd.f32 %v908_v53, %v907_v10  ;;  %v964_v61 = vrot.slane %v963_v55, 1 }
 0x865   : > { %v910_v62 = vrot.slane %v909_v57, 1  ;;  %v965_v40 = vadd.f32 %v964_v61, %v963_v55 }
 0x867   : > { %v911_v0 = vadd.f32 %v910_v62, %v909_v57 }
 0x869   : > { %2336 = vpush %v911_v0 }
 0x86a   : > { %2338 = vpush %v965_v40 }
 0x873   : > { %1525 = vadd.xlane.f32.xlu0 %v1524_v14 }
 0x889   : > { %v449_v37 = vpop.permute.xlu1 %448 }
 0x88a   : > { %v452_v13 = vadd.f32 %v449_v37, %v3099_v52 }
 0x88e   : > { %v1549_v36 = vpop.permute.xlu1 %1548 }
 0x88f   : > { %v1551_v51 = vadd.f32 %v1549_v36, %v3104_v16  ;;  %v383_v36 = vand.u32 127, %v379_v8 }
 0x891   : > { %1554 = vrot.lane.b32.xlu1 %v1551_v51, %s2520_s30  ;;  %v1547_v15 = vpop.permute.xlu0 %1546  ;;  %vm460_vm0 = vcmp.lt.s32.totalorder %v383_v36, 4  ;;  %vm913_vm1 = vcmp.eq.s32.totalorder %v383_v36, 4  ;;  %vm917_vm2 = vcmp.eq.s32.totalorder %v383_v36, 5 }
 0x892   : > { %v1550_v12 = vadd.f32 %v1547_v15, %v3109_v6  ;;  %v986_v17 = vpop.permute.xlu1 %985 }
 0x893   : > { %v989_v7 = vadd.f32 %v986_v17, %v3112_v22 }
 0x894   : > { %1552 = vrot.lane.b32.xlu0 %v1550_v12, %s2520_s30  ;;  %s3150_s14 = spop %2334 }
 0x896   : > { %v988_v6 = vpop.permute.xlu1 %987 }
 0x897   : > { %v990_v52 = vadd.f32 %v988_v6, %v3119_v31 }
 0x898   : > { %454 = vrot.lane.b32.xlu0 %v452_v13, %s2521_s26 }
 0x89a   : > { %s2337_s18 = spop %2336 }
 0x89b   : > { %s2339_s20 = spop %2338 }
 0x89c   : > { %991 = vrot.lane.b32.xlu0 %v989_v7, %s2521_s26  ;;  %v1485_v8 = vstv %s2339_s20 }
 0x8cb   : > { %v1474_v18 = vpop.xlane.xlu0 %1473 }
 0x8cc   : > { %v1475_v35 = vrot.slane %v1474_v18, 4 }
 0x8ce   : > { %v1476_v16 = vadd.f32 %v1475_v35, %v1474_v18 }
 0x8cf   : > { %v451_v19 = vpop.permute.xlu0 %450 }
 0x8d0   : > { %v1477_v30 = vrot.slane %v1476_v16, 2  ;;  %v453_v21 = vadd.f32 %v451_v19, %v3129_v59 }
 0x8d2   : > { %456 = vrot.lane.b32.xlu1 %v453_v21, %s2521_s26  ;;  %v1478_v2 = vadd.f32 %v1477_v30, %v1476_v16 }
 0x8d4   : > { %v1479_v26 = vrot.slane %v1478_v2, 1 }
 0x8d5   : > { %v1852_v22 = vpop.xlane.xlu1 %1851 }
 0x8d6   : > { %993 = vrot.lane.b32.xlu1 %v990_v52, %s2521_s26  ;;  %v1480_v27 = vadd.f32 %v1479_v26, %v1478_v2  ;;  %v1853_v28 = vrot.slane %v1852_v22, 4  ;;  %v918_v2 = vstv %s3150_s14 }
 0x8d8   : > { %2340 = vpush %v1480_v27  ;;  %v1854_v42 = vadd.f32 %v1853_v28, %v1852_v22  ;;  %v1486_v27 = vsel %vm917_vm2, %v1485_v8, 0.0 }
 0x8da   : > { %v1855_v20 = vrot.slane %v1854_v42, 2 }
 0x8dc   : > { %v1856_v32 = vadd.f32 %v1855_v20, %v1854_v42 }
 0x8de   : > { %v1857_v44 = vrot.slane %v1856_v32, 1 }
 0x8e0   : > { %v1858_v46 = vadd.f32 %v1857_v44, %v1856_v32 }
 0x900   : > { %v1526_v24 = vpop.xlane.xlu0 %1525 }
 0x901   : > { %v1527_v29 = vrot.slane %v1526_v24, 4 }
 0x903   : > { %v1528_v63 = vadd.f32 %v1527_v29, %v1526_v24  ;;  %v1555_v3 = vpop.permute.xlu1 %1554  ;;  %v919_v24 = vsel %vm917_vm2, %v918_v2, 0.0 }
 0x904   : > { %v1557_v59 = vadd.f32 %v1555_v3, %v1551_v51 }
 0x905   : > { %v1529_v33 = vrot.slane %v1528_v63, 2 }
 0x906   : > { %1560 = vrot.lane.b32.xlu1 %v1557_v59, %s2521_s26  ;;  %v1553_v34 = vpop.permute.xlu0 %1552 }
 0x907   : > { %v1556_v31 = vadd.f32 %v1553_v34, %v1550_v12  ;;  %v1530_v43 = vadd.f32 %v1529_v33, %v1528_v63  ;;  %v1914_v34 = vld [vmem:[%s3093_s11] sm:$0xff] (%p2597_p5) }
 0x909   : > { %1558 = vrot.lane.b32.xlu0 %v1556_v31, %s2521_s26  ;;  %v1531_v25 = vrot.slane %v1530_v43, 1  ;;  %s2341_s21 = spop %2340  ;;  %s1884_s26 = scalar_lea.vmem (%p2597_p5), %s3195_s8, %s2080_s19 }
 0x90a   : > { %v455_v9 = vpop.permute.xlu0 %454  ;;  %v1482_v12 = vstv %s2341_s21  ;;  %1915 = vst [vmem:[%s1884_s26] sm:$0xff] (%p2597_p5), %v1914_v34 }
 0x90b   : > { %v1532_v45 = vadd.f32 %v1531_v25, %v1530_v43  ;;  %v458_v54 = vadd.f32 %v455_v9, %v452_v13  ;;  %v1483_v35 = vsel %vm913_vm1, %v1482_v12, 0.0 }
 0x90d   : > { %2342 = vpush %v1532_v45 }
 0x90e   : > { %2344 = vpush %v1858_v46  ;;  %v992_v48 = vpop.permute.xlu0 %991 }
 0x90f   : > { %v995_v50 = vadd.f32 %v992_v48, %v989_v7  ;;  %v914_v7 = vstv %s2337_s18 }
 0x93e   : > { %s2343_s22 = spop %2342 }
 0x93f   : > { %s2345_s23 = spop %2344  ;;  %v1863_v22 = vstv %s2343_s22 }
 0x940   : > { %v1860_v6 = vstv %s2345_s23  ;;  %v1864_v63 = vsel %vm917_vm2, %v1863_v22, 0.0 }
 0x941   : > { %v1861_v28 = vsel %vm913_vm1, %v1860_v6, 0.0 }
 0x944   : > { %v457_v47 = vpop.permute.xlu1 %456 }
 0x945   : > { %v459_v53 = vadd.f32 %v457_v47, %v453_v21  ;;  %v915_v21 = vsel %vm913_vm1, %v914_v7, 0.0 }
 0x947   : > { %v461_v56 = vadd.f32 %v459_v53, %v458_v54 }
 0x948   : > { %v994_v10 = vpop.permute.xlu1 %993 }
 0x949   : > { %v996_v49 = vadd.f32 %v994_v10, %v990_v52  ;;  %v462_v58 = vrot.slane %v461_v56, 4 }
 0x94b   : > { %v997_v55 = vadd.f32 %v996_v49, %v995_v50  ;;  %v463_v61 = vadd.f32 %v462_v58, %v461_v56 }
 0x94d   : > { %v998_v57 = vrot.slane %v997_v55, 4  ;;  %v464_v38 = vrot.slane %v463_v61, 2 }
 0x94f   : > { %v999_v60 = vadd.f32 %v998_v57, %v997_v55  ;;  %v465_v11 = vadd.f32 %v464_v38, %v463_v61 }
 0x951   : > { %v1000_v62 = vrot.slane %v999_v60, 2  ;;  %v466_v41 = vrot.slane %v465_v11, 1 }
 0x953   : > { %v1001_v39 = vadd.f32 %v1000_v62, %v999_v60  ;;  %v467_v15 = vadd.f32 %v466_v41, %v465_v11 }
 0x955   : > { %v1002_v4 = vrot.slane %v1001_v39, 1  ;;  %v468_v16 = vsel %vm460_vm0, %v467_v15, 0.0 }
 0x956   : > { %v916_v52 = vadd.f32 %v915_v21, %v468_v16 }
 0x957   : > { %v1003_v37 = vadd.f32 %v1002_v4, %v1001_v39 }
 0x958   : > { %v920_v3 = vadd.f32 %v919_v24, %v916_v52 }
 0x959   : > { %v1004_v17 = vsel %vm460_vm0, %v1003_v37, 0.0 }
 0x95a   : > { %v1484_v19 = vadd.f32 %v1483_v35, %v1004_v17 }
 0x95c   : > { %v1487_v42 = vadd.f32 %v1486_v27, %v1484_v19 }
 0x95e   : > { %v1869_v32 = vsel %vm1868_vm3, %v920_v3, %v1487_v42 }
 0x978   : > { %v1561_v0 = vpop.permute.xlu1 %1560 }
 0x979   : > { %v1563_v40 = vadd.f32 %v1561_v0, %v1557_v59 }
 0x97b   : > { %v1559_v1 = vpop.permute.xlu0 %1558 }
 0x97c   : > { %v1562_v23 = vadd.f32 %v1559_v1, %v1556_v31  ;;  %v1916_v31 = vld [vmem:[%s3093_s11 + $0x8] sm:$0xff] (%p2597_p5) }
 0x97d   : > { %1917 = vst [vmem:[%s1884_s26 + $0x10] sm:$0xff] (%p2597_p5), %v1916_v31 }
 0x97e   : > { %v1564_v5 = vadd.f32 %v1563_v40, %v1562_v23 }
 0x980   : > { %v1565_v14 = vrot.slane %v1564_v5, 4 }
 0x982   : > { %v1566_v51 = vadd.f32 %v1565_v14, %v1564_v5 }
 0x984   : > { %v1567_v13 = vrot.slane %v1566_v51, 2 }
 0x986   : > { %v1568_v18 = vadd.f32 %v1567_v13, %v1566_v51 }
 0x988   : > { %v1569_v30 = vrot.slane %v1568_v18, 1 }
 0x98a   : > { %v1570_v26 = vadd.f32 %v1569_v30, %v1568_v18 }
 0x98c   : > { %v1571_v20 = vsel %vm460_vm0, %v1570_v26, 0.0  ;;  %1882 = sbr.rel (!%p2597_p5) target bundleno = 2451 (0x993), region = 94 }
 0x98d   : > { %v1862_v29 = vadd.f32 %v1861_v28, %v1571_v20 }
 0x98f   : > { %v1865_v59 = vadd.f32 %v1864_v63, %v1862_v29 }
 0x991   : > { %v1870_v33 = vsel %vm772_vm4, %v1869_v32, %v1865_v59 }
 0x992   : > { %1871 = vst [vmem:[%s375_s15] sm:$0x7] %v1870_v33 }
 0x993 PF: > { %p17_p11 = scmp.ge.s32.totalorder %s2587_s13, 4   ;;  %s3198_s30 = smov %s2506_s10 }
 0x994   : > { %s3199_s10 = smov %s2595_s16  ;;  %s3200_s11 = smov %s2587_s13 }
 0x995   :  { %19 = sbr.rel (!%p17_p11) target bundleno = 2 (0x2), region = 175 }

</bundles_post_ra>
